<compile_context>
chip_gen: v6e
topology: v6e:2x2x1
jax: 0.10.0
libtpu: 0.0.40
codegen_flags: <defaults>
</compile_context>

<pallas_src>
import functools

import jax
import jax.numpy as jnp
from jax import lax
from jax.experimental import pallas as pl
from jax.experimental.pallas import tpu as pltpu


def hamburger_kernel(x_ref, w1_ref, b1_ref, w2_ref, b2_ref, basesT_ref, out_ref,
                     *, steps, inv_t, eps, n_valid):
    f32 = jnp.float32
    bf16 = jnp.bfloat16

    x = x_ref[0]              # (C, Np) f32
    w1 = w1_ref[...]          # (C, C)  bf16  ham_in weight  (out_ch, in_ch)
    b1 = b1_ref[...]          # (C, 1)  f32
    w2 = w2_ref[...]          # (C, C)  bf16  ham_out weight
    b2 = b2_ref[...]          # (C, 1)  f32
    basesT0 = basesT_ref[0]   # (R, D=C) f32  (bases transposed, lane-dense on D)

    n_pad = x.shape[-1]

    def abT(a, b):
        # a @ b^T (contract trailing axis) without materializing a transpose.
        return lax.dot_general(a, b, (((1,), (1,)), ((), ())),
                               preferred_element_type=f32)

    def dTd(a, b):
        # a^T @ b (contract leading axis) without materializing a transpose.
        return lax.dot_general(a, b, (((0,), (0,)), ((), ())),
                               preferred_element_type=f32)

    # --- ham_in: 1x1 conv (bf16 MXU, f32 accumulate) + bias + ReLU ---
    enjoy = jnp.dot(w1, x.astype(bf16), preferred_element_type=f32) + b1
    enjoy = jnp.maximum(enjoy, 0.0)                                   # (D, Np) f32

    # Zero padded spatial columns so they contribute nothing to the NMF statistics.
    if n_valid < n_pad:
        col = lax.broadcasted_iota(jnp.int32, enjoy.shape, 1)
        enjoy = jnp.where(col < n_valid, enjoy, 0.0)

    enjoy_bf = enjoy.astype(bf16)   # only ever consumed by MXU dots

    # --- NMF2D.local_inference: initial coefficient, transposed as (R, Np) ---
    # softmax over R is a reduction over axis 0 (sublanes); N stays lane-dense.
    s = inv_t * jnp.dot(basesT0.astype(bf16), enjoy_bf, preferred_element_type=f32)  # (R, Np)
    s = s - jnp.max(s, axis=0, keepdims=True)
    e = jnp.exp(s)
    coefT = e * pl.reciprocal(jnp.sum(e, axis=0, keepdims=True), approx=True)

    # --- multiplicative-update iterations (NMF2D.local_step) ---
    def mu_step(_, carry):
        basesT, coefT = carry                                          # (R,D) f32, (R,Np) f32
        basesT_bf = basesT.astype(bf16)
        # coefficient update: every (R, Np) tensor is lane-dense on Np
        numT = jnp.dot(basesT_bf, enjoy_bf, preferred_element_type=f32)      # (R, Np)
        btb = abT(basesT_bf, basesT_bf)                                      # (R, R) symmetric
        denT = jnp.dot(btb.astype(bf16), coefT.astype(bf16),
                       preferred_element_type=f32)                           # (R, Np)
        coefT = coefT * numT * pl.reciprocal(denT + eps, approx=True)
        # bases update: every (R, D) tensor is lane-dense on D
        coefT_bf = coefT.astype(bf16)
        numB = abT(coefT_bf, enjoy_bf)                                       # (R, D) = coef^T@x^T
        ctc = abT(coefT_bf, coefT_bf)                                        # (R, R) symmetric
        denB = jnp.dot(ctc.astype(bf16), basesT_bf,
                       preferred_element_type=f32)                           # (R, D)
        basesT = basesT * numB * pl.reciprocal(denB + eps, approx=True)
        return basesT, coefT

    basesT, coefT = lax.fori_loop(0, steps, mu_step, (basesT0, coefT), unroll=True)

    # --- NMF2D.compute_coef (final coefficient refresh) ---
    basesT_bf = basesT.astype(bf16)
    numT = jnp.dot(basesT_bf, enjoy_bf, preferred_element_type=f32)
    btb = abT(basesT_bf, basesT_bf)
    denT = jnp.dot(btb.astype(bf16), coefT.astype(bf16), preferred_element_type=f32)
    coefT = coefT * numT * pl.reciprocal(denT + eps, approx=True)

    # --- reconstruction: bases @ coef^T == basesT^T @ coefT -> lane-dense (D, Np) ---
    recon = dTd(basesT_bf, coefT.astype(bf16))

    # --- ham_out: 1x1 conv (no norm, no act) ---
    out2 = jnp.dot(w2, recon.astype(bf16), preferred_element_type=f32) + b2

    # --- residual + ReLU ---
    out_ref[0] = jnp.maximum(x + out2, 0.0)


def hamburger(x_nchw, w1, b1, w2, b2, bases, *, steps=6, inv_t=1.0, eps=1e-6):
    B, C, H, W = x_nchw.shape
    N = H * W
    R = bases.shape[-1]
    Np = ((N + 127) // 128) * 128      # lane-dense spatial axis (multiple of 128)

    x = x_nchw.reshape(B, C, N).astype(jnp.float32)
    if Np != N:
        x = jnp.pad(x, ((0, 0), (0, 0), (0, Np - N)))

    w1b = w1.astype(jnp.bfloat16)
    w2b = w2.astype(jnp.bfloat16)
    b1c = b1.reshape(C, 1).astype(jnp.float32)
    b2c = b2.reshape(C, 1).astype(jnp.float32)
    # Bases transposed once, outside the kernel: (B, R, D) so in-kernel MU math is lane-dense on D.
    basesT = jnp.swapaxes(bases.astype(jnp.float32), 1, 2)

    # Explicit VMEM budget: double-buffered per-sample blocks + in-kernel intermediates,
    # capped below the v7x 64 MiB per-TensorCore physical ceiling.
    vmem_need = (4 * C * Np * 4        # x + out blocks, double-buffered, f32
                 + 4 * C * Np * 4      # enjoy (f32 + bf16), recon, out2 intermediates
                 + 4 * C * C * 2       # w1, w2 bf16, double-buffered
                 + 6 * R * Np * 4      # coefT f32 + bf16 copies in the MU loop
                 + 8 * R * C * 4       # basesT + MU temporaries
                 + (4 << 20))          # regalloc / misc headroom
    vmem_limit = int(min(max(vmem_need, 16 << 20), 60 << 20))

    kernel = functools.partial(hamburger_kernel, steps=steps, inv_t=inv_t,
                               eps=eps, n_valid=N)
    out = pl.pallas_call(
        kernel,
        out_shape=jax.ShapeDtypeStruct((B, C, Np), jnp.float32),
        grid_spec=pltpu.PrefetchScalarGridSpec(
            num_scalar_prefetch=0,
            grid=(B,),
            in_specs=[
                pl.BlockSpec((1, C, Np), lambda b: (b, 0, 0)),   # x (per-sample)
                pl.BlockSpec((C, C), lambda b: (0, 0)),          # w1 (bf16)
                pl.BlockSpec((C, 1), lambda b: (0, 0)),          # b1
                pl.BlockSpec((C, C), lambda b: (0, 0)),          # w2 (bf16)
                pl.BlockSpec((C, 1), lambda b: (0, 0)),          # b2
                pl.BlockSpec((1, R, C), lambda b: (b, 0, 0)),    # basesT (per-sample)
            ],
            out_specs=pl.BlockSpec((1, C, Np), lambda b: (b, 0, 0)),
        ),
        compiler_params=pltpu.CompilerParams(
            dimension_semantics=("parallel",),    # batch axis shards across TCs (v7x megacore)
            vmem_limit_bytes=vmem_limit),
    )(x, w1b, b1c, w2b, b2c, basesT)

    out = out[:, :, :N]
    return out.reshape(B, C, H, W)


def hamburger_ref(x_nchw, w1, b1, w2, b2, bases, *, steps=6, inv_t=1.0, eps=1e-6):
    """Pure-JAX f32 reference mirroring the PyTorch forward."""
    B, C, H, W = x_nchw.shape
    N = H * W
    x = x_nchw.reshape(B, C, N)
    enjoy = jnp.einsum('oc,bcn->bon', w1, x) + b1[None, :, None]
    enjoy = jnp.maximum(enjoy, 0.0)
    bs = bases
    coef = jax.nn.softmax(inv_t * jnp.einsum('bdn,bdr->bnr', enjoy, bs), axis=-1)
    for _ in range(steps):
        num = jnp.einsum('bdn,bdr->bnr', enjoy, bs)
        den = jnp.einsum('bnr,brk->bnk', coef, jnp.einsum('bdr,bdk->brk', bs, bs))
        coef = coef * num / (den + eps)
        num = jnp.einsum('bdn,bnr->bdr', enjoy, coef)
        den = jnp.einsum('bdr,brk->bdk', bs, jnp.einsum('bnr,bnk->brk', coef, coef))
        bs = bs * num / (den + eps)
    num = jnp.einsum('bdn,bdr->bnr', enjoy, bs)
    den = jnp.einsum('bnr,brk->bnk', coef, jnp.einsum('bdr,bdk->brk', bs, bs))
    coef = coef * num / (den + eps)
    y = jnp.einsum('bdr,bnr->bdn', bs, coef)
    out2 = jnp.einsum('oc,bcn->bon', w2, y) + b2[None, :, None]
    return jnp.maximum(x + out2, 0.0).reshape(B, C, H, W)


if __name__ == "__main__":
    # Small shapes consistent with the module: ham_channels=C, MD_S=1, MD_R=R.
    B, C, H, W = 2, 16, 8, 8
    R = 8
    STEPS = 6          # module default training mode -> train_steps=6
    INV_T = 1.0        # NMF2D forces inv_t = 1

    key = jax.random.PRNGKey(0)
    kx, kw1, kb1, kw2, kb2, kbases = jax.random.split(key, 6)

    x = jax.random.normal(kx, (B, C, H, W), dtype=jnp.float32)

    # Deterministic parameter init (1x1 conv weights flattened to (out_ch, in_ch)).
    w1 = jax.random.normal(kw1, (C, C), dtype=jnp.float32) * 0.1
    b1 = jax.random.normal(kb1, (C,), dtype=jnp.float32) * 0.1
    w2 = jax.random.normal(kw2, (C, C), dtype=jnp.float32) * 0.1
    b2 = jax.random.normal(kb2, (C,), dtype=jnp.float32) * 0.1

    # NMF bases: uniform [0,1) then L2-normalize along D (mirrors _build_bases).
    # TODO(synk): _build_bases randomness (torch.rand) is generated host-side and passed in.
    bases = jax.random.uniform(kbases, (B, C, R), dtype=jnp.float32)
    bases = bases / jnp.maximum(jnp.linalg.norm(bases, axis=1, keepdims=True), 1e-12)

    out = hamburger(x, w1, b1, w2, b2, bases, steps=STEPS, inv_t=INV_T)
    out = jax.block_until_ready(out)

    ref = hamburger_ref(x, w1, b1, w2, b2, bases, steps=STEPS, inv_t=INV_T)
    assert out.shape == (B, C, H, W)
    # Tolerance accounts for bf16 MXU inputs + approximate EUP reciprocals over 7 MU updates.
    assert jnp.max(jnp.abs(out - ref)) < 5e-2, "mismatch vs pure-JAX reference"

    print("KERNEL_OK")
</pallas_src>

<mosaic_0001>
module attributes {stable_mosaic.version = 11 : i64} {
  func.func @hamburger_kernel(%arg0: i32, %arg1: memref<1x16x128xf32, #tpu.memory_space<vmem>>, %arg2: memref<16x16xbf16, #tpu.memory_space<vmem>>, %arg3: memref<16x1xf32, #tpu.memory_space<vmem>>, %arg4: memref<16x16xbf16, #tpu.memory_space<vmem>>, %arg5: memref<16x1xf32, #tpu.memory_space<vmem>>, %arg6: memref<1x8x16xf32, #tpu.memory_space<vmem>>, %arg7: memref<1x16x128xf32, #tpu.memory_space<vmem>>) attributes {dimension_semantics = [#tpu.dimension_semantics<parallel>], iteration_bounds = array<i64: 2>, scalar_prefetch = 0 : i64, scratch_operands = 0 : i64, tpu.core_type = #tpu.core_type<tc>, window_params = [{transform_indices = @transform_0, window_bounds = array<i64: 1, 16, 128>}, {pipeline_mode = #tpu.pipeline_mode<synchronous>, transform_indices = @transform_1, window_bounds = array<i64: 16, 16>}, {pipeline_mode = #tpu.pipeline_mode<synchronous>, transform_indices = @transform_2, window_bounds = array<i64: 16, 1>}, {pipeline_mode = #tpu.pipeline_mode<synchronous>, transform_indices = @transform_3, window_bounds = array<i64: 16, 16>}, {pipeline_mode = #tpu.pipeline_mode<synchronous>, transform_indices = @transform_4, window_bounds = array<i64: 16, 1>}, {transform_indices = @transform_5, window_bounds = array<i64: 1, 8, 16>}, {transform_indices = @transform_6, window_bounds = array<i64: 1, 16, 128>}]} {
    %c0 = arith.constant 0 : index
    %c0_0 = arith.constant 0 : index
    %c0_1 = arith.constant 0 : index
    %0 = vector.load %arg1[%c0, %c0_0, %c0_1] : memref<1x16x128xf32, #tpu.memory_space<vmem>>, vector<1x16x128xf32>
    %1 = vector.shape_cast %0 : vector<1x16x128xf32> to vector<16x128xf32>
    %c0_2 = arith.constant 0 : index
    %c0_3 = arith.constant 0 : index
    %2 = vector.load %arg2[%c0_2, %c0_3] : memref<16x16xbf16, #tpu.memory_space<vmem>>, vector<16x16xbf16>
    %c0_4 = arith.constant 0 : index
    %c0_5 = arith.constant 0 : index
    %3 = vector.load %arg3[%c0_4, %c0_5] : memref<16x1xf32, #tpu.memory_space<vmem>>, vector<16x1xf32>
    %c0_6 = arith.constant 0 : index
    %c0_7 = arith.constant 0 : index
    %4 = vector.load %arg4[%c0_6, %c0_7] : memref<16x16xbf16, #tpu.memory_space<vmem>>, vector<16x16xbf16>
    %c0_8 = arith.constant 0 : index
    %c0_9 = arith.constant 0 : index
    %5 = vector.load %arg5[%c0_8, %c0_9] : memref<16x1xf32, #tpu.memory_space<vmem>>, vector<16x1xf32>
    %c0_10 = arith.constant 0 : index
    %c0_11 = arith.constant 0 : index
    %c0_12 = arith.constant 0 : index
    %6 = vector.load %arg6[%c0_10, %c0_11, %c0_12] : memref<1x8x16xf32, #tpu.memory_space<vmem>>, vector<1x8x16xf32>
    %7 = vector.shape_cast %6 : vector<1x8x16xf32> to vector<8x16xf32>
    %8 = arith.truncf %1 : vector<16x128xf32> to vector<16x128xbf16>
    %cst = arith.constant dense<0.000000e+00> : vector<16x128xf32>
    %9 = tpu.matmul %2, %8, %cst {dimension_numbers = #tpu.dot_dimension_numbers<[1], [0], [0], [1], [0, 0, 1, 1], [], []>} : vector<16x16xbf16>, vector<16x128xbf16>, vector<16x128xf32> -> vector<16x128xf32>
    %10 = vector.broadcast %3 : vector<16x1xf32> to vector<16x128xf32>
    %11 = arith.addf %9, %10 : vector<16x128xf32>
    %cst_13 = arith.constant 0.000000e+00 : f32
    %12 = vector.broadcast %cst_13 : f32 to vector<16x128xf32>
    %13 = arith.maximumf %11, %12 : vector<16x128xf32>
    %14 = tpu.iota {dimensions = array<i32: 1>} : vector<16x128xi32>
    %c64_i32 = arith.constant 64 : i32
    %15 = vector.broadcast %c64_i32 : i32 to vector<16x128xi32>
    %16 = arith.cmpi slt, %14, %15 : vector<16x128xi32>
    %cst_14 = arith.constant 0.000000e+00 : f32
    %17 = vector.broadcast %cst_14 : f32 to vector<16x128xf32>
    %18 = arith.select %16, %13, %17 : vector<16x128xi1>, vector<16x128xf32>
    %19 = arith.truncf %18 : vector<16x128xf32> to vector<16x128xbf16>
    %20 = arith.truncf %7 : vector<8x16xf32> to vector<8x16xbf16>
    %cst_15 = arith.constant dense<0.000000e+00> : vector<8x128xf32>
    %21 = tpu.matmul %20, %19, %cst_15 {dimension_numbers = #tpu.dot_dimension_numbers<[1], [0], [0], [1], [0, 0, 1, 1], [], []>} : vector<8x16xbf16>, vector<16x128xbf16>, vector<8x128xf32> -> vector<8x128xf32>
    %cst_16 = arith.constant 1.000000e+00 : f32
    %22 = vector.broadcast %cst_16 : f32 to vector<8x128xf32>
    %23 = arith.mulf %22, %21 : vector<8x128xf32>
    %cst_17 = arith.constant dense<0xFF800000> : vector<128xf32>
    %24 = vector.multi_reduction <maximumf>, %23, %cst_17 [0] : vector<8x128xf32> to vector<128xf32>
    %25 = vector.shape_cast %24 : vector<128xf32> to vector<1x128xf32>
    %26 = vector.broadcast %25 : vector<1x128xf32> to vector<8x128xf32>
    %27 = arith.subf %23, %26 : vector<8x128xf32>
    %28 = math.exp %27 : vector<8x128xf32>
    %cst_18 = arith.constant dense<0.000000e+00> : vector<128xf32>
    %29 = vector.multi_reduction <add>, %28, %cst_18 [0] : vector<8x128xf32> to vector<128xf32>
    %30 = vector.shape_cast %29 : vector<128xf32> to vector<1x128xf32>
    %31 = tpu.reciprocal %30 {approx = true} : vector<1x128xf32> -> vector<1x128xf32>
    %32 = vector.broadcast %31 : vector<1x128xf32> to vector<8x128xf32>
    %33 = arith.mulf %28, %32 : vector<8x128xf32>
    %c0_i32 = arith.constant 0 : i32
    %34 = arith.truncf %7 : vector<8x16xf32> to vector<8x16xbf16>
    %cst_19 = arith.constant dense<0.000000e+00> : vector<8x128xf32>
    %35 = tpu.matmul %34, %19, %cst_19 {dimension_numbers = #tpu.dot_dimension_numbers<[1], [0], [0], [1], [0, 0, 1, 1], [], []>} : vector<8x16xbf16>, vector<16x128xbf16>, vector<8x128xf32> -> vector<8x128xf32>
    %cst_20 = arith.constant dense<0.000000e+00> : vector<8x8xf32>
    %36 = tpu.matmul %34, %34, %cst_20 {dimension_numbers = #tpu.dot_dimension_numbers<[1], [1], [0], [0], [0, 0, 1, 0], [], []>} : vector<8x16xbf16>, vector<8x16xbf16>, vector<8x8xf32> -> vector<8x8xf32>
    %37 = arith.truncf %36 : vector<8x8xf32> to vector<8x8xbf16>
    %38 = arith.truncf %33 : vector<8x128xf32> to vector<8x128xbf16>
    %cst_21 = arith.constant dense<0.000000e+00> : vector<8x128xf32>
    %39 = tpu.matmul %37, %38, %cst_21 {dimension_numbers = #tpu.dot_dimension_numbers<[1], [0], [0], [1], [0, 0, 1, 1], [], []>} : vector<8x8xbf16>, vector<8x128xbf16>, vector<8x128xf32> -> vector<8x128xf32>
    %40 = arith.mulf %33, %35 : vector<8x128xf32>
    %cst_22 = arith.constant 9.99999997E-7 : f32
    %41 = vector.broadcast %cst_22 : f32 to vector<8x128xf32>
    %42 = arith.addf %39, %41 : vector<8x128xf32>
    %43 = tpu.reciprocal %42 {approx = true} : vector<8x128xf32> -> vector<8x128xf32>
    %44 = arith.mulf %40, %43 : vector<8x128xf32>
    %45 = arith.truncf %44 : vector<8x128xf32> to vector<8x128xbf16>
    %cst_23 = arith.constant dense<0.000000e+00> : vector<8x16xf32>
    %46 = tpu.matmul %45, %19, %cst_23 {dimension_numbers = #tpu.dot_dimension_numbers<[1], [1], [0], [0], [0, 0, 1, 0], [], []>} : vector<8x128xbf16>, vector<16x128xbf16>, vector<8x16xf32> -> vector<8x16xf32>
    %cst_24 = arith.constant dense<0.000000e+00> : vector<8x8xf32>
    %47 = tpu.matmul %45, %45, %cst_24 {dimension_numbers = #tpu.dot_dimension_numbers<[1], [1], [0], [0], [0, 0, 1, 0], [], []>} : vector<8x128xbf16>, vector<8x128xbf16>, vector<8x8xf32> -> vector<8x8xf32>
    %48 = arith.truncf %47 : vector<8x8xf32> to vector<8x8xbf16>
    %cst_25 = arith.constant dense<0.000000e+00> : vector<8x16xf32>
    %49 = tpu.matmul %48, %34, %cst_25 {dimension_numbers = #tpu.dot_dimension_numbers<[1], [0], [0], [1], [0, 0, 1, 1], [], []>} : vector<8x8xbf16>, vector<8x16xbf16>, vector<8x16xf32> -> vector<8x16xf32>
    %50 = arith.mulf %7, %46 : vector<8x16xf32>
    %cst_26 = arith.constant 9.99999997E-7 : f32
    %51 = vector.broadcast %cst_26 : f32 to vector<8x16xf32>
    %52 = arith.addf %49, %51 : vector<8x16xf32>
    %53 = tpu.reciprocal %52 {approx = true} : vector<8x16xf32> -> vector<8x16xf32>
    %54 = arith.mulf %50, %53 : vector<8x16xf32>
    %c1_i32 = arith.constant 1 : i32
    %55 = arith.truncf %54 : vector<8x16xf32> to vector<8x16xbf16>
    %cst_27 = arith.constant dense<0.000000e+00> : vector<8x128xf32>
    %56 = tpu.matmul %55, %19, %cst_27 {dimension_numbers = #tpu.dot_dimension_numbers<[1], [0], [0], [1], [0, 0, 1, 1], [], []>} : vector<8x16xbf16>, vector<16x128xbf16>, vector<8x128xf32> -> vector<8x128xf32>
    %cst_28 = arith.constant dense<0.000000e+00> : vector<8x8xf32>
    %57 = tpu.matmul %55, %55, %cst_28 {dimension_numbers = #tpu.dot_dimension_numbers<[1], [1], [0], [0], [0, 0, 1, 0], [], []>} : vector<8x16xbf16>, vector<8x16xbf16>, vector<8x8xf32> -> vector<8x8xf32>
    %58 = arith.truncf %57 : vector<8x8xf32> to vector<8x8xbf16>
    %59 = arith.truncf %44 : vector<8x128xf32> to vector<8x128xbf16>
    %cst_29 = arith.constant dense<0.000000e+00> : vector<8x128xf32>
    %60 = tpu.matmul %58, %59, %cst_29 {dimension_numbers = #tpu.dot_dimension_numbers<[1], [0], [0], [1], [0, 0, 1, 1], [], []>} : vector<8x8xbf16>, vector<8x128xbf16>, vector<8x128xf32> -> vector<8x128xf32>
    %61 = arith.mulf %44, %56 : vector<8x128xf32>
    %cst_30 = arith.constant 9.99999997E-7 : f32
    %62 = vector.broadcast %cst_30 : f32 to vector<8x128xf32>
    %63 = arith.addf %60, %62 : vector<8x128xf32>
    %64 = tpu.reciprocal %63 {approx = true} : vector<8x128xf32> -> vector<8x128xf32>
    %65 = arith.mulf %61, %64 : vector<8x128xf32>
    %66 = arith.truncf %65 : vector<8x128xf32> to vector<8x128xbf16>
    %cst_31 = arith.constant dense<0.000000e+00> : vector<8x16xf32>
    %67 = tpu.matmul %66, %19, %cst_31 {dimension_numbers = #tpu.dot_dimension_numbers<[1], [1], [0], [0], [0, 0, 1, 0], [], []>} : vector<8x128xbf16>, vector<16x128xbf16>, vector<8x16xf32> -> vector<8x16xf32>
    %cst_32 = arith.constant dense<0.000000e+00> : vector<8x8xf32>
    %68 = tpu.matmul %66, %66, %cst_32 {dimension_numbers = #tpu.dot_dimension_numbers<[1], [1], [0], [0], [0, 0, 1, 0], [], []>} : vector<8x128xbf16>, vector<8x128xbf16>, vector<8x8xf32> -> vector<8x8xf32>
    %69 = arith.truncf %68 : vector<8x8xf32> to vector<8x8xbf16>
    %cst_33 = arith.constant dense<0.000000e+00> : vector<8x16xf32>
    %70 = tpu.matmul %69, %55, %cst_33 {dimension_numbers = #tpu.dot_dimension_numbers<[1], [0], [0], [1], [0, 0, 1, 1], [], []>} : vector<8x8xbf16>, vector<8x16xbf16>, vector<8x16xf32> -> vector<8x16xf32>
    %71 = arith.mulf %54, %67 : vector<8x16xf32>
    %cst_34 = arith.constant 9.99999997E-7 : f32
    %72 = vector.broadcast %cst_34 : f32 to vector<8x16xf32>
    %73 = arith.addf %70, %72 : vector<8x16xf32>
    %74 = tpu.reciprocal %73 {approx = true} : vector<8x16xf32> -> vector<8x16xf32>
    %75 = arith.mulf %71, %74 : vector<8x16xf32>
    %c2_i32 = arith.constant 2 : i32
    %76 = arith.truncf %75 : vector<8x16xf32> to vector<8x16xbf16>
    %cst_35 = arith.constant dense<0.000000e+00> : vector<8x128xf32>
    %77 = tpu.matmul %76, %19, %cst_35 {dimension_numbers = #tpu.dot_dimension_numbers<[1], [0], [0], [1], [0, 0, 1, 1], [], []>} : vector<8x16xbf16>, vector<16x128xbf16>, vector<8x128xf32> -> vector<8x128xf32>
    %cst_36 = arith.constant dense<0.000000e+00> : vector<8x8xf32>
    %78 = tpu.matmul %76, %76, %cst_36 {dimension_numbers = #tpu.dot_dimension_numbers<[1], [1], [0], [0], [0, 0, 1, 0], [], []>} : vector<8x16xbf16>, vector<8x16xbf16>, vector<8x8xf32> -> vector<8x8xf32>
    %79 = arith.truncf %78 : vector<8x8xf32> to vector<8x8xbf16>
    %80 = arith.truncf %65 : vector<8x128xf32> to vector<8x128xbf16>
    %cst_37 = arith.constant dense<0.000000e+00> : vector<8x128xf32>
    %81 = tpu.matmul %79, %80, %cst_37 {dimension_numbers = #tpu.dot_dimension_numbers<[1], [0], [0], [1], [0, 0, 1, 1], [], []>} : vector<8x8xbf16>, vector<8x128xbf16>, vector<8x128xf32> -> vector<8x128xf32>
    %82 = arith.mulf %65, %77 : vector<8x128xf32>
    %cst_38 = arith.constant 9.99999997E-7 : f32
    %83 = vector.broadcast %cst_38 : f32 to vector<8x128xf32>
    %84 = arith.addf %81, %83 : vector<8x128xf32>
    %85 = tpu.reciprocal %84 {approx = true} : vector<8x128xf32> -> vector<8x128xf32>
    %86 = arith.mulf %82, %85 : vector<8x128xf32>
    %87 = arith.truncf %86 : vector<8x128xf32> to vector<8x128xbf16>
    %cst_39 = arith.constant dense<0.000000e+00> : vector<8x16xf32>
    %88 = tpu.matmul %87, %19, %cst_39 {dimension_numbers = #tpu.dot_dimension_numbers<[1], [1], [0], [0], [0, 0, 1, 0], [], []>} : vector<8x128xbf16>, vector<16x128xbf16>, vector<8x16xf32> -> vector<8x16xf32>
    %cst_40 = arith.constant dense<0.000000e+00> : vector<8x8xf32>
    %89 = tpu.matmul %87, %87, %cst_40 {dimension_numbers = #tpu.dot_dimension_numbers<[1], [1], [0], [0], [0, 0, 1, 0], [], []>} : vector<8x128xbf16>, vector<8x128xbf16>, vector<8x8xf32> -> vector<8x8xf32>
    %90 = arith.truncf %89 : vector<8x8xf32> to vector<8x8xbf16>
    %cst_41 = arith.constant dense<0.000000e+00> : vector<8x16xf32>
    %91 = tpu.matmul %90, %76, %cst_41 {dimension_numbers = #tpu.dot_dimension_numbers<[1], [0], [0], [1], [0, 0, 1, 1], [], []>} : vector<8x8xbf16>, vector<8x16xbf16>, vector<8x16xf32> -> vector<8x16xf32>
    %92 = arith.mulf %75, %88 : vector<8x16xf32>
    %cst_42 = arith.constant 9.99999997E-7 : f32
    %93 = vector.broadcast %cst_42 : f32 to vector<8x16xf32>
    %94 = arith.addf %91, %93 : vector<8x16xf32>
    %95 = tpu.reciprocal %94 {approx = true} : vector<8x16xf32> -> vector<8x16xf32>
    %96 = arith.mulf %92, %95 : vector<8x16xf32>
    %c3_i32 = arith.constant 3 : i32
    %97 = arith.truncf %96 : vector<8x16xf32> to vector<8x16xbf16>
    %cst_43 = arith.constant dense<0.000000e+00> : vector<8x128xf32>
    %98 = tpu.matmul %97, %19, %cst_43 {dimension_numbers = #tpu.dot_dimension_numbers<[1], [0], [0], [1], [0, 0, 1, 1], [], []>} : vector<8x16xbf16>, vector<16x128xbf16>, vector<8x128xf32> -> vector<8x128xf32>
    %cst_44 = arith.constant dense<0.000000e+00> : vector<8x8xf32>
    %99 = tpu.matmul %97, %97, %cst_44 {dimension_numbers = #tpu.dot_dimension_numbers<[1], [1], [0], [0], [0, 0, 1, 0], [], []>} : vector<8x16xbf16>, vector<8x16xbf16>, vector<8x8xf32> -> vector<8x8xf32>
    %100 = arith.truncf %99 : vector<8x8xf32> to vector<8x8xbf16>
    %101 = arith.truncf %86 : vector<8x128xf32> to vector<8x128xbf16>
    %cst_45 = arith.constant dense<0.000000e+00> : vector<8x128xf32>
    %102 = tpu.matmul %100, %101, %cst_45 {dimension_numbers = #tpu.dot_dimension_numbers<[1], [0], [0], [1], [0, 0, 1, 1], [], []>} : vector<8x8xbf16>, vector<8x128xbf16>, vector<8x128xf32> -> vector<8x128xf32>
    %103 = arith.mulf %86, %98 : vector<8x128xf32>
    %cst_46 = arith.constant 9.99999997E-7 : f32
    %104 = vector.broadcast %cst_46 : f32 to vector<8x128xf32>
    %105 = arith.addf %102, %104 : vector<8x128xf32>
    %106 = tpu.reciprocal %105 {approx = true} : vector<8x128xf32> -> vector<8x128xf32>
    %107 = arith.mulf %103, %106 : vector<8x128xf32>
    %108 = arith.truncf %107 : vector<8x128xf32> to vector<8x128xbf16>
    %cst_47 = arith.constant dense<0.000000e+00> : vector<8x16xf32>
    %109 = tpu.matmul %108, %19, %cst_47 {dimension_numbers = #tpu.dot_dimension_numbers<[1], [1], [0], [0], [0, 0, 1, 0], [], []>} : vector<8x128xbf16>, vector<16x128xbf16>, vector<8x16xf32> -> vector<8x16xf32>
    %cst_48 = arith.constant dense<0.000000e+00> : vector<8x8xf32>
    %110 = tpu.matmul %108, %108, %cst_48 {dimension_numbers = #tpu.dot_dimension_numbers<[1], [1], [0], [0], [0, 0, 1, 0], [], []>} : vector<8x128xbf16>, vector<8x128xbf16>, vector<8x8xf32> -> vector<8x8xf32>
    %111 = arith.truncf %110 : vector<8x8xf32> to vector<8x8xbf16>
    %cst_49 = arith.constant dense<0.000000e+00> : vector<8x16xf32>
    %112 = tpu.matmul %111, %97, %cst_49 {dimension_numbers = #tpu.dot_dimension_numbers<[1], [0], [0], [1], [0, 0, 1, 1], [], []>} : vector<8x8xbf16>, vector<8x16xbf16>, vector<8x16xf32> -> vector<8x16xf32>
    %113 = arith.mulf %96, %109 : vector<8x16xf32>
    %cst_50 = arith.constant 9.99999997E-7 : f32
    %114 = vector.broadcast %cst_50 : f32 to vector<8x16xf32>
    %115 = arith.addf %112, %114 : vector<8x16xf32>
    %116 = tpu.reciprocal %115 {approx = true} : vector<8x16xf32> -> vector<8x16xf32>
    %117 = arith.mulf %113, %116 : vector<8x16xf32>
    %c4_i32 = arith.constant 4 : i32
    %118 = arith.truncf %117 : vector<8x16xf32> to vector<8x16xbf16>
    %cst_51 = arith.constant dense<0.000000e+00> : vector<8x128xf32>
    %119 = tpu.matmul %118, %19, %cst_51 {dimension_numbers = #tpu.dot_dimension_numbers<[1], [0], [0], [1], [0, 0, 1, 1], [], []>} : vector<8x16xbf16>, vector<16x128xbf16>, vector<8x128xf32> -> vector<8x128xf32>
    %cst_52 = arith.constant dense<0.000000e+00> : vector<8x8xf32>
    %120 = tpu.matmul %118, %118, %cst_52 {dimension_numbers = #tpu.dot_dimension_numbers<[1], [1], [0], [0], [0, 0, 1, 0], [], []>} : vector<8x16xbf16>, vector<8x16xbf16>, vector<8x8xf32> -> vector<8x8xf32>
    %121 = arith.truncf %120 : vector<8x8xf32> to vector<8x8xbf16>
    %122 = arith.truncf %107 : vector<8x128xf32> to vector<8x128xbf16>
    %cst_53 = arith.constant dense<0.000000e+00> : vector<8x128xf32>
    %123 = tpu.matmul %121, %122, %cst_53 {dimension_numbers = #tpu.dot_dimension_numbers<[1], [0], [0], [1], [0, 0, 1, 1], [], []>} : vector<8x8xbf16>, vector<8x128xbf16>, vector<8x128xf32> -> vector<8x128xf32>
    %124 = arith.mulf %107, %119 : vector<8x128xf32>
    %cst_54 = arith.constant 9.99999997E-7 : f32
    %125 = vector.broadcast %cst_54 : f32 to vector<8x128xf32>
    %126 = arith.addf %123, %125 : vector<8x128xf32>
    %127 = tpu.reciprocal %126 {approx = true} : vector<8x128xf32> -> vector<8x128xf32>
    %128 = arith.mulf %124, %127 : vector<8x128xf32>
    %129 = arith.truncf %128 : vector<8x128xf32> to vector<8x128xbf16>
    %cst_55 = arith.constant dense<0.000000e+00> : vector<8x16xf32>
    %130 = tpu.matmul %129, %19, %cst_55 {dimension_numbers = #tpu.dot_dimension_numbers<[1], [1], [0], [0], [0, 0, 1, 0], [], []>} : vector<8x128xbf16>, vector<16x128xbf16>, vector<8x16xf32> -> vector<8x16xf32>
    %cst_56 = arith.constant dense<0.000000e+00> : vector<8x8xf32>
    %131 = tpu.matmul %129, %129, %cst_56 {dimension_numbers = #tpu.dot_dimension_numbers<[1], [1], [0], [0], [0, 0, 1, 0], [], []>} : vector<8x128xbf16>, vector<8x128xbf16>, vector<8x8xf32> -> vector<8x8xf32>
    %132 = arith.truncf %131 : vector<8x8xf32> to vector<8x8xbf16>
    %cst_57 = arith.constant dense<0.000000e+00> : vector<8x16xf32>
    %133 = tpu.matmul %132, %118, %cst_57 {dimension_numbers = #tpu.dot_dimension_numbers<[1], [0], [0], [1], [0, 0, 1, 1], [], []>} : vector<8x8xbf16>, vector<8x16xbf16>, vector<8x16xf32> -> vector<8x16xf32>
    %134 = arith.mulf %117, %130 : vector<8x16xf32>
    %cst_58 = arith.constant 9.99999997E-7 : f32
    %135 = vector.broadcast %cst_58 : f32 to vector<8x16xf32>
    %136 = arith.addf %133, %135 : vector<8x16xf32>
    %137 = tpu.reciprocal %136 {approx = true} : vector<8x16xf32> -> vector<8x16xf32>
    %138 = arith.mulf %134, %137 : vector<8x16xf32>
    %c5_i32 = arith.constant 5 : i32
    %139 = arith.truncf %138 : vector<8x16xf32> to vector<8x16xbf16>
    %cst_59 = arith.constant dense<0.000000e+00> : vector<8x128xf32>
    %140 = tpu.matmul %139, %19, %cst_59 {dimension_numbers = #tpu.dot_dimension_numbers<[1], [0], [0], [1], [0, 0, 1, 1], [], []>} : vector<8x16xbf16>, vector<16x128xbf16>, vector<8x128xf32> -> vector<8x128xf32>
    %cst_60 = arith.constant dense<0.000000e+00> : vector<8x8xf32>
    %141 = tpu.matmul %139, %139, %cst_60 {dimension_numbers = #tpu.dot_dimension_numbers<[1], [1], [0], [0], [0, 0, 1, 0], [], []>} : vector<8x16xbf16>, vector<8x16xbf16>, vector<8x8xf32> -> vector<8x8xf32>
    %142 = arith.truncf %141 : vector<8x8xf32> to vector<8x8xbf16>
    %143 = arith.truncf %128 : vector<8x128xf32> to vector<8x128xbf16>
    %cst_61 = arith.constant dense<0.000000e+00> : vector<8x128xf32>
    %144 = tpu.matmul %142, %143, %cst_61 {dimension_numbers = #tpu.dot_dimension_numbers<[1], [0], [0], [1], [0, 0, 1, 1], [], []>} : vector<8x8xbf16>, vector<8x128xbf16>, vector<8x128xf32> -> vector<8x128xf32>
    %145 = arith.mulf %128, %140 : vector<8x128xf32>
    %cst_62 = arith.constant 9.99999997E-7 : f32
    %146 = vector.broadcast %cst_62 : f32 to vector<8x128xf32>
    %147 = arith.addf %144, %146 : vector<8x128xf32>
    %148 = tpu.reciprocal %147 {approx = true} : vector<8x128xf32> -> vector<8x128xf32>
    %149 = arith.mulf %145, %148 : vector<8x128xf32>
    %150 = arith.truncf %149 : vector<8x128xf32> to vector<8x128xbf16>
    %cst_63 = arith.constant dense<0.000000e+00> : vector<8x16xf32>
    %151 = tpu.matmul %150, %19, %cst_63 {dimension_numbers = #tpu.dot_dimension_numbers<[1], [1], [0], [0], [0, 0, 1, 0], [], []>} : vector<8x128xbf16>, vector<16x128xbf16>, vector<8x16xf32> -> vector<8x16xf32>
    %cst_64 = arith.constant dense<0.000000e+00> : vector<8x8xf32>
    %152 = tpu.matmul %150, %150, %cst_64 {dimension_numbers = #tpu.dot_dimension_numbers<[1], [1], [0], [0], [0, 0, 1, 0], [], []>} : vector<8x128xbf16>, vector<8x128xbf16>, vector<8x8xf32> -> vector<8x8xf32>
    %153 = arith.truncf %152 : vector<8x8xf32> to vector<8x8xbf16>
    %cst_65 = arith.constant dense<0.000000e+00> : vector<8x16xf32>
    %154 = tpu.matmul %153, %139, %cst_65 {dimension_numbers = #tpu.dot_dimension_numbers<[1], [0], [0], [1], [0, 0, 1, 1], [], []>} : vector<8x8xbf16>, vector<8x16xbf16>, vector<8x16xf32> -> vector<8x16xf32>
    %155 = arith.mulf %138, %151 : vector<8x16xf32>
    %cst_66 = arith.constant 9.99999997E-7 : f32
    %156 = vector.broadcast %cst_66 : f32 to vector<8x16xf32>
    %157 = arith.addf %154, %156 : vector<8x16xf32>
    %158 = tpu.reciprocal %157 {approx = true} : vector<8x16xf32> -> vector<8x16xf32>
    %159 = arith.mulf %155, %158 : vector<8x16xf32>
    %160 = arith.truncf %159 : vector<8x16xf32> to vector<8x16xbf16>
    %cst_67 = arith.constant dense<0.000000e+00> : vector<8x128xf32>
    %161 = tpu.matmul %160, %19, %cst_67 {dimension_numbers = #tpu.dot_dimension_numbers<[1], [0], [0], [1], [0, 0, 1, 1], [], []>} : vector<8x16xbf16>, vector<16x128xbf16>, vector<8x128xf32> -> vector<8x128xf32>
    %cst_68 = arith.constant dense<0.000000e+00> : vector<8x8xf32>
    %162 = tpu.matmul %160, %160, %cst_68 {dimension_numbers = #tpu.dot_dimension_numbers<[1], [1], [0], [0], [0, 0, 1, 0], [], []>} : vector<8x16xbf16>, vector<8x16xbf16>, vector<8x8xf32> -> vector<8x8xf32>
    %163 = arith.truncf %162 : vector<8x8xf32> to vector<8x8xbf16>
    %164 = arith.truncf %149 : vector<8x128xf32> to vector<8x128xbf16>
    %cst_69 = arith.constant dense<0.000000e+00> : vector<8x128xf32>
    %165 = tpu.matmul %163, %164, %cst_69 {dimension_numbers = #tpu.dot_dimension_numbers<[1], [0], [0], [1], [0, 0, 1, 1], [], []>} : vector<8x8xbf16>, vector<8x128xbf16>, vector<8x128xf32> -> vector<8x128xf32>
    %166 = arith.mulf %149, %161 : vector<8x128xf32>
    %cst_70 = arith.constant 9.99999997E-7 : f32
    %167 = vector.broadcast %cst_70 : f32 to vector<8x128xf32>
    %168 = arith.addf %165, %167 : vector<8x128xf32>
    %169 = tpu.reciprocal %168 {approx = true} : vector<8x128xf32> -> vector<8x128xf32>
    %170 = arith.mulf %166, %169 : vector<8x128xf32>
    %171 = arith.truncf %170 : vector<8x128xf32> to vector<8x128xbf16>
    %cst_71 = arith.constant dense<0.000000e+00> : vector<16x128xf32>
    %172 = tpu.matmul %160, %171, %cst_71 {dimension_numbers = #tpu.dot_dimension_numbers<[0], [0], [1], [1], [0, 1, 1, 1], [], []>} : vector<8x16xbf16>, vector<8x128xbf16>, vector<16x128xf32> -> vector<16x128xf32>
    %173 = arith.truncf %172 : vector<16x128xf32> to vector<16x128xbf16>
    %cst_72 = arith.constant dense<0.000000e+00> : vector<16x128xf32>
    %174 = tpu.matmul %4, %173, %cst_72 {dimension_numbers = #tpu.dot_dimension_numbers<[1], [0], [0], [1], [0, 0, 1, 1], [], []>} : vector<16x16xbf16>, vector<16x128xbf16>, vector<16x128xf32> -> vector<16x128xf32>
    %175 = vector.broadcast %5 : vector<16x1xf32> to vector<16x128xf32>
    %176 = arith.addf %174, %175 : vector<16x128xf32>
    %177 = arith.addf %1, %176 : vector<16x128xf32>
    %cst_73 = arith.constant 0.000000e+00 : f32
    %178 = vector.broadcast %cst_73 : f32 to vector<16x128xf32>
    %179 = arith.maximumf %177, %178 : vector<16x128xf32>
    %c0_74 = arith.constant 0 : index
    %c0_75 = arith.constant 0 : index
    %c0_76 = arith.constant 0 : index
    %180 = vector.load %arg7[%c0_74, %c0_75, %c0_76] : memref<1x16x128xf32, #tpu.memory_space<vmem>>, vector<1x16x128xf32>
    %181 = vector.shape_cast %180 : vector<1x16x128xf32> to vector<16x128xf32>
    %182 = vector.shape_cast %179 : vector<16x128xf32> to vector<1x16x128xf32>
    tpu.vector_store %arg7[%c0_74, %c0_75, %c0_76], %182 {strides = array<i32>} : memref<1x16x128xf32, #tpu.memory_space<vmem>>, vector<1x16x128xf32>,
    return
  }
  func.func @transform_0(%arg0: i32) -> (i32, i32, i32) {
    %c0_i32 = arith.constant 0 : i32
    %c0_i32_0 = arith.constant 0 : i32
    %c0_i32_1 = arith.constant 0 : i32
    return %arg0, %c0_i32, %c0_i32_0 : i32, i32, i32
  }
  func.func @transform_1(%arg0: i32) -> (i32, i32) {
    %c0_i32 = arith.constant 0 : i32
    %c0_i32_0 = arith.constant 0 : i32
    %c0_i32_1 = arith.constant 0 : i32
    return %c0_i32, %c0_i32_0 : i32, i32
  }
  func.func @transform_2(%arg0: i32) -> (i32, i32) {
    %c0_i32 = arith.constant 0 : i32
    %c0_i32_0 = arith.constant 0 : i32
    %c0_i32_1 = arith.constant 0 : i32
    return %c0_i32, %c0_i32_0 : i32, i32
  }
  func.func @transform_3(%arg0: i32) -> (i32, i32) {
    %c0_i32 = arith.constant 0 : i32
    %c0_i32_0 = arith.constant 0 : i32
    %c0_i32_1 = arith.constant 0 : i32
    return %c0_i32, %c0_i32_0 : i32, i32
  }
  func.func @transform_4(%arg0: i32) -> (i32, i32) {
    %c0_i32 = arith.constant 0 : i32
    %c0_i32_0 = arith.constant 0 : i32
    %c0_i32_1 = arith.constant 0 : i32
    return %c0_i32, %c0_i32_0 : i32, i32
  }
  func.func @transform_5(%arg0: i32) -> (i32, i32, i32) {
    %c0_i32 = arith.constant 0 : i32
    %c0_i32_0 = arith.constant 0 : i32
    %c0_i32_1 = arith.constant 0 : i32
    return %arg0, %c0_i32, %c0_i32_0 : i32, i32, i32
  }
  func.func @transform_6(%arg0: i32) -> (i32, i32, i32) {
    %c0_i32 = arith.constant 0 : i32
    %c0_i32_0 = arith.constant 0 : i32
    %c0_i32_1 = arith.constant 0 : i32
    return %arg0, %c0_i32, %c0_i32_0 : i32, i32, i32
  }
}

</mosaic_0001>

<bundles_post_ra>
// kernel: tpu_custom_call.1
= control target key start
LH: loop header
LB: loop body
LE: loop exit
PB: predicated region body
PF: predicated region fallthrough
CT: control target
= control target key end

     0   :  { %s3617_s0 = inlined_call_operand.vmem [shape: f32[2,16,128], index: 0, kind: input, shape index: {}]   ;;  %s3618_s1 = inlined_call_operand.hbm [shape: bf16[16,16], index: 1, kind: input, shape index: {}]   ;;  %s3619_s2 = inlined_call_operand.vmem [shape: f32[16,1], index: 2, kind: input, shape index: {}]   ;;  %s3620_s3 = inlined_call_operand.hbm [shape: bf16[16,16], index: 3, kind: input, shape index: {}]   ;;  %s3621_s4 = inlined_call_operand.vmem [shape: f32[16,1], index: 4, kind: input, shape index: {}]   ;;  %s3622_s5 = inlined_call_operand.hbm [shape: f32[2,8,16], index: 5, kind: input, shape index: {}]   ;;  %s3623_s6 = inlined_call_operand.hbm [shape: f32[2,16,128], index: 6, kind: output, shape index: {}]  }
   0x1   :  { %3628 = sst [smem:[#allocation13_spill]] %s3618_s1 }
   0x2   :  { %11 = vsyncpa [#allocation3], 0 }
   0x3   :  { %12 = vsyncpa [#allocation6], 0 }
   0x4   :  { %13 = vsyncpa [#allocation4], 0 }
   0x5   :  { %15 = vsyncpa [#allocation4 + $0x1], 0  ;;  %s3117_s21 = smov 0   ;;  %s3119_s22 = smov 0  }
   0x6   :  { %s3121_s23 = smov 0   ;;  %s3123_s24 = smov 0  }
   0x7 LB: > { %s3138_s25 = sadd.s32 4294967295, %s3069_s24   ;;  %s2381_s26 = sadd.s32 4294967294, %s3069_s24   ;;  %s3069_s24 = sphi %s3123_s24, %s3651_s24   ;;  %s3065_s23 = sphi %s3121_s23, %s3650_s23   ;;  %s3061_s22 = sphi %s3119_s22, %s3649_s22   ;;  %s3057_s21 = sphi %s3117_s21, %s3648_s21  }
   0x8   : > { %p151_p0 = scmp.ne.s32.totalorder %s3061_s22, %s3057_s21  ;;  %p3624_p1 = scmp.eq.s32.totalorder %s3138_s25, 0 }
   0x9   : > { %p181_p3 = scmp.eq.s32.totalorder %s2381_s26, 1  ;;  %p2382_p5 = scmp.ge.s32.totalorder %s3069_s24, 1 }
   0xa   : > { %p3147_p4 = por %p3624_p1, %p151_p0  ;;  %p188_p7 = scmp.lt.s32.totalorder %s3069_s24, 3 }
   0xb   : > { %p3152_p6 = por %p181_p3, %p151_p0  ;;  %s3071_s30 = smov [#allocation2]  }
   0xc   : > { %s3629_s27 = scalar_select %p3147_p4, 1, 0 }
   0xd   : > { %s3630_s28 = scalar_select %p3152_p6, 1, 0 }
   0xe   : > { %p3157_p8 = pnand %p2382_p5, %p188_p7  ;;  %s200_s7 = sshll.u32 %s3071_s30, 4  ;;  %s201_s7 = int_to_ptr.vmem [resolvable:$true] %s200_s7 }
   0xf   : > { %s3072_s9 = smov [#allocation5]   ;;  %s2928_s11 = scalar_lea.vmem %s201_s7, 128 }
  0x10   : > { %s3631_s29 = scalar_select %p3157_p8, 1, 0 }
  0x11   : > { %p2821_p9 = pneg %p3157_p8  ;;  %s216_s10 = sshll.u32 %s3072_s9, 4  ;;  %s217_s10 = int_to_ptr.vmem [resolvable:$true] %s216_s10 }
  0x12   : > { %p2929_p13 = scmp.ne.s32.totalorder %s201_s7, %s2928_s11  ;;  %p2936_p5 = scmp.lt.s32.totalorder %s201_s7, %s201_s7 }
  0x13   : > { %p3166_p11 = pnand %p2821_p9, %p3624_p1  ;;  %p2937_p7 = scmp.lt.s32.totalorder %s2928_s11, %s2928_s11 }
  0x15   : > { %p2919_p12 = pneg %p3166_p11  ;;  %p2938_p10 = por %p2937_p7, %p2936_p5 }
  0x17   : > { %p2931_p0 = pnand %p2929_p13, %p2919_p12 }
  0x19   : > { %p2932_p3 = pneg %p2931_p0 }
  0x1b   : > { %p2939_p9 = pnand %p2938_p10, %p2932_p3 }
  0x1d   : > { %2942 = shalt.err (!%p2939_p9)
}
  0x1e   : > { %s3073_s12 = smov 64   ;;  %s3074_s13 = smov 4  }
  0x1f   : > { %s3633_s1 = sld [smem:[#allocation13_spill]]  ;;  %s2954_s16 = scalar_lea.vmem %s217_s10, 128 }
  0x20   : > { %p2955_p1 = scmp.ne.s32.totalorder %s217_s10, %s2954_s16  ;;  %p2962_p2 = scmp.lt.s32.totalorder %s217_s10, %s217_s10 }
  0x21   : > { %p2963_p6 = scmp.lt.s32.totalorder %s2954_s16, %s2954_s16 }
  0x22   : > { %p2957_p13 = pnand %p2955_p1, %p2919_p12 }
  0x23   : > { %p2964_p5 = por %p2963_p6, %p2962_p2 }
  0x24   : > { %p2958_p0 = pneg %p2957_p13 }
  0x25   : > { %2824 = dma.hbm_to_vmem [thread:$0]  (!%p3166_p11), %s3633_s1, 128, %s201_s7, [#allocation3], %s3073_s12, %s3073_s12, %s3074_s13  }
  0x26   : > { %p2965_p10 = pnand %p2964_p5, %p2958_p0 }
  0x28   : > { %2968 = shalt.err (!%p2965_p10)
}
  0x29   : > { %2827 = dma.hbm_to_vmem [thread:$0]  (!%p3166_p11), %s3620_s3, 128, %s217_s10, [#allocation6], %s3073_s12, %s3073_s12, %s3074_s13  }
  0x2a   : > { %s3189_s19 = sadd.s32 1, %s3069_s24   ;;  %s138_s20 = sadd.s32 1, %s3065_s23 }
  0x2b   : > { %s135_s26 = ssub.s32 %s3069_s24, %s3189_s19  ;;  %p145_p1 = scmp.ne.s32.totalorder %s3065_s23, %s3061_s22 }
  0x2c   : > { %p136_p2 = scmp.eq.s32.totalorder %s135_s26, 0  ;;  %p146_p6 = scmp.eq.s32.totalorder %s3069_s24, 0 }
  0x2d   : > { %p3634_p12 = scmp.eq.s32.totalorder %s3138_s25, 1  ;;  %p2838_p7 = scmp.lt.s32.totalorder %s3069_s24, 2 }
  0x2e   : > { %s3205_s7 = scalar_select %p136_p2, %s3065_s23, %s138_s20  }
  0x2f   : > { %p3199_p3 = por %p3634_p12, %p145_p1  ;;  %p147_p9 = por %p146_p6, %p145_p1 }
  0x30   : > { %s241_s8 = sand.u32 1, %s3069_s24   ;;  %s243_s9 = sand.u32 1, %s3065_s23  }
  0x31   : > { %s3635_s30 = scalar_select %p3199_p3, 1, 0 }
  0x32   : > { %s2386_s10 = sshll.u32 %s243_s9, 3  ;;  %s2387_s11 = sshll.u32 %s3069_s24, 7 }
  0x33   : > { %s3213_s14 = scalar_lea.hbm %s3622_s5, %s2387_s11  ;;  %s245_s15 = scalar_lea.vmem [#allocation7], %s2386_s10 }
  0x34   : > { %s252_s16 = sshll.u32 %s245_s15, 4  ;;  %p3215_p11 = pnand %p2838_p7, %p147_p9  ;;  %s253_s16 = int_to_ptr.vmem [resolvable:$true] %s252_s16 }
  0x35   : > { %s242_s18 = scalar_lea.sflag [#allocation3], %s241_s8  ;;  %s2969_s20 = scalar_lea.hbm %s3213_s14, 128 }
  0x36   : > { %p2970_p13 = scmp.ne.s32.totalorder %s3213_s14, %s2969_s20  ;;  %p2971_p0 = pneg %p3215_p11 }
  0x37   : > { %s2974_s11 = scalar_lea.hbm %s3622_s5, 256  ;;  %p2975_p1 = scmp.lt.s32.totalorder %s3213_s14, %s3622_s5 }
  0x38   : > { %p2972_p5 = pnand %p2971_p0, %p2970_p13  ;;  %p2976_p2 = scmp.lt.s32.totalorder %s2974_s11, %s2969_s20 }
  0x3a   : > { %p2973_p10 = pneg %p2972_p5  ;;  %p2977_p6 = por %p2976_p2, %p2975_p1 }
  0x3c   : > { %p2978_p12 = pnand %p2977_p6, %p2973_p10 }
  0x3e   : > { %2981 = shalt.err (!%p2978_p12)
}
  0x3f   : > { %s2982_s13 = scalar_lea.vmem %s253_s16, 128  ;;  %s3075_s8 = smov [#allocation7]  }
  0x40   : > { %p2983_p7 = scmp.ne.s32.totalorder %s253_s16, %s2982_s13  ;;  %s2987_s15 = sshll.u32 %s3075_s8, 4  ;;  %s2988_s15 = int_to_ptr.vmem [resolvable:$false] %s2987_s15 }
  0x41   : > { %s2989_s1 = scalar_lea.vmem %s2988_s15, 256  ;;  %p2990_p13 = scmp.lt.s32.totalorder %s253_s16, %s2988_s15 }
  0x42   : > { %p2985_p9 = pnand %p2983_p7, %p2971_p0  ;;  %p2991_p5 = scmp.lt.s32.totalorder %s2989_s1, %s2982_s13 }
  0x44   : > { %p2986_p3 = pneg %p2985_p9  ;;  %p2992_p4 = por %p2991_p5, %p2990_p13 }
  0x46   : > { %p2993_p8 = pnand %p2992_p4, %p2986_p3 }
  0x48   : > { %2996 = shalt.err (!%p2993_p8)
}
  0x49   : > { %2831 = dma.hbm_to_vmem [thread:$0]  (!%p3215_p11), %s3213_s14, 128, %s253_s16, %s242_s18  }
  0x4a   : > { %p3637_p10 = scmp.ne.s32.totalorder %s3631_s29, 0 }
  0x4b   : > { %p3638_p1 = scmp.eq.s32.totalorder (!%p3637_p10), %s3138_s25, 0 }
  0x4c   : > { %261 = sbr.rel (%p3637_p10) target bundleno = 6188 (0x182c), region = 44 }
  0x51   : > { %3040 = dma.done.wait (%p3638_p1), [#allocation3], 128   ;;  %p3639_p0 = pmov %p3638_p1 }
  0x53   : > { %3042 = vsyncadd (%p3639_p0), [#allocation3], 4294967168  ;;  %p3640_p2 = pmov %p3639_p0 }
  0x54   : > { %p3641_p6 = pmov %p3639_p0 }
  0x55   : > { %3044 = dma.done.wait (%p3640_p2), [#allocation6], 128  }
  0x56   : > { %3046 = vsyncadd (%p3641_p6), [#allocation6], 4294967168  ;;  %s271_s1 = sand.u32 1, %s3138_s25   ;;  %s3245_s14 = sand.u32 1, %s3061_s22  }
  0x57   : > { %s2391_s29 = sshll.u32 %s3245_s14, 3  ;;  %s272_s16 = scalar_lea.sflag [#allocation3], %s271_s1 }
  0x58   : > { %s275_s17 = scalar_lea.vmem [#allocation7], %s2391_s29  ;;  %p3642_p4 = scmp.ne.s32.totalorder %s3629_s27, 0 }
  0x5a   : > { %3048 = dma.done.wait (%p3642_p4), %s272_s16, 128  }
  0x5b   : > { %3050 = vsyncadd (%p3642_p4), %s272_s16, 4294967168  ;;  %p309_p8 = scmp.lt.s32.totalorder %s3138_s25, 1  ;;  %v3076_v0 = vmov 0.0   ;;  %vm3077_vm0 = vmmov 0   ;;  %v3078_v1 = vmov 0   ;;  %v319_v5 = vld [vmem:[%s3619_s2] sm:$0xff]  ;;  %v389_v12 = vlaneseq }
  0x5c   : > { %2557 = vmatprep.subr.bf16.mxu0 %v3076_v0  ;;  %2559 = vmatprep.mubr.msk.bf16.mxu0 %vm3077_vm0, %v3076_v0  ;;  %v2885_v6 = vld [vmem:[#allocation2] sm:$0xff]   ;;  %vm342_vm1 = vcmask 130048   ;;  %v320_v7 = vld [vmem:[%s3619_s2 + $0x8] sm:$0xff]  ;;  %v3283_v9 = vld [vmem:[%s275_s17] sm:$0xff]  ;;  %vm503_vm4 = vcmask 1043456   ;;  %vm499_vm5 = vcmask 64512  }
  0x5d   : > { %s310_s18 = scalar_select %p309_p8, %s3138_s25, 1  ;;  %2883 = vset.pattern.permute.xlu0 %v3078_v1  ;;  %2563 = vmatprep.subr.bf16.mxu1 %v3076_v0  ;;  %v324_v8 = vld [vmem:[%s3621_s4 + $0x8] sm:$0xff]  ;;  %v3287_v10 = vpack.c.bf16 %v3283_v9, %v3283_v9  ;;  %v390_v15 = vand.u32 127, %v389_v12 }
  0x5e   : > { %2565 = vmatprep.mubr.msk.bf16.mxu1 %vm3077_vm0, %v3076_v0  ;;  %329 = vperm.xlu0 %2883, %v319_v5   ;;  %s2392_s16 = sshll.u32 %s3245_s14, 4  ;;  %s2264_s11 = scalar_lea.sflag [#allocation4], %s3245_s14 }
  0x5f   : > { %s2471_s27 = sshll.u32 %s310_s18, 4  ;;  %v397_v11 = vsel %vm342_vm1, %v3287_v10, 0  ;;  %vm391_vm2 = vcmp.lt.s32.totalorder %v390_v15, 64  ;;  %v635_v63 = vsel %vm503_vm4, %v3287_v10, 0  ;;  %s308_s17 = scalar_lea.vmem [#allocation8], %s2392_s16 }
  0x60   : > { %s313_s9 = scalar_lea.vmem %s3617_s0, %s2471_s27  ;;  %vm3296_vm3 = vmpackc.low %vm391_vm2, %vm391_vm2  ;;  %s2277_s18 = sshll.u32 %s308_s17, 4  ;;  %s3569_s18 = int_to_ptr.vmem [resolvable:$true] %s2277_s18 }
  0x61   : > { %v3264_v2 = vld [vmem:[%s313_s9] sm:$0xff]  ;;  %v3266_v3 = vld [vmem:[%s313_s9 + $0x8] sm:$0xff]  ;;  %s2472_s27 = sshll.u32 %s3138_s25, 8  ;;  %s2997_s12 = scalar_lea.vmem %s3569_s18, 256 }
  0x62   : > { %v326_v4 = vpack.c.bf16 %v3266_v3, %v3264_v2  ;;  %334 = vperm.xlu0 %2883, %v320_v7   ;;  %s3574_s9 = scalar_lea.hbm %s3623_s6, %s2472_s27  ;;  %p2998_p3 = scmp.ne.s32.totalorder %s3569_s18, %s2997_s12 }
  0x63   : > { %p3645_p11 = scmp.ne.s32.totalorder %s3635_s30, 0  ;;  %s3079_s25 = smov [#allocation8]  }
  0x64   : > { %2558 = vmatpush3.bf16.msra.mxu0 %v326_v4  ;;  %s3001_s10 = sshll.u32 %s3079_s25, 4  ;;  %s3002_s10 = int_to_ptr.vmem [resolvable:$false] %s3001_s10 }
  0x65   : > { %2569 = vmatprep.subr.bf16.mxu0 %v3076_v0  ;;  %p2999_p12 = pnand %p2998_p3, %p3645_p11  ;;  %s3003_s13 = scalar_lea.vmem %s3002_s10, 512 }
  0x66   : > { %2205 = vperm.xlu0 %2883, %v324_v8   ;;  %p3004_p9 = scmp.lt.s32.totalorder %s3569_s18, %s3002_s10  ;;  %p3005_p13 = scmp.lt.s32.totalorder %s3003_s13, %s2997_s12 }
  0x67   : > { %2560 = vmatmul.mubr.msk.bf16.vlgmr.msra.gmra.mxu0 %vm342_vm1, %v2885_v6  ;;  %p3000_p7 = pneg %p2999_p12 }
  0x68   : > { %2571 = vmatprep.mubr.msk.bf16.mxu0 %vm3077_vm0, %v3076_v0  ;;  %2570 = vmatpush3.bf16.xpose.msra.mxu0 %v397_v11  ;;  %p3006_p5 = por %p3005_p13, %p3004_p9 }
  0x69   : > { %2581 = vmatprep.subr.bf16.mxu0 %v3076_v0 }
  0x6a   : > { %p3007_p10 = pnand %p3006_p5, %p3000_p7 }
  0x6f   : > { %2572 = vmatmul.mubr.msk.bf16.vlgmr.msra.gmra.mxu0 %vm342_vm1, %v3287_v10 }
  0x70   : > { %2583 = vmatprep.mubr.msk.bf16.mxu0 %vm3077_vm0, %v3076_v0 }
  0xd9   : > { %v330_v13 = vpop.permute.xlu0 %329 }
  0xdd   : > { %v335_v18 = vpop.permute.xlu0 %334 }
 0x127   : > { %v380_v14 = vpop.f32.mrf.mxu0 }
 0x128   : > { %v381_v17 = vadd.f32 %v380_v14, %v330_v13 }
 0x129   : > { %v2561_v16 = vpop.f32.mrf.mxu0 }
 0x12a   : > { %v387_v22 = vmax.f32 %v381_v17, 0.0 }
 0x12b   : > { %v383_v19 = vpop.f32.mrf.mxu0 }
 0x12c   : > { %v384_v20 = vadd.f32 %v383_v19, %v335_v18 }
 0x12d   : > { %v2562_v21 = vpop.f32.mrf.mxu0 }
 0x12e   : > { %v388_v23 = vmax.f32 %v384_v20, 0.0 }
 0x12f   : > { %v490_v26 = vpop.f32.mrf.mxu0 }
 0x130   : > { %v3300_v25 = vpack.c.bf16 %v388_v23, %v387_v22  ;;  %v496_v53 = vpack.c.bf16 %v490_v26, %v490_v26 }
 0x131   : > { %v2573_v27 = vpop.f32.mrf.mxu0 }
 0x132   : > { %2564 = vmatpush3.bf16.msk.msra.mxu1 %vm3296_vm3, %v3300_v25  ;;  %2582 = vmatpush3.bf16.xpose.msk.msra.mxu0 %vm3296_vm3, %v3300_v25 }
 0x133   : > { %2575 = vmatprep.subr.bf16.mxu1 %v3076_v0  ;;  %2593 = vmatprep.subr.bf16.mxu0 %v3076_v0  ;;  %v493_v28 = vpop.f32.mrf.mxu0 }
 0x135   : > { %2566 = vmatmul.mubr.msk.bf16.vlgmr.msra.gmra.mxu1 %vm342_vm1, %v3287_v10  ;;  %v2574_v29 = vpop.f32.mrf.mxu0 }
 0x136   : > { %2577 = vmatprep.mubr.msk.bf16.mxu1 %vm3077_vm0, %v3076_v0 }
 0x1f5   : > { %v433_v30 = vpop.f32.mrf.mxu1 }
 0x1f6   : > { %v439_v31 = vrot.slane %v433_v30, 4 }
 0x1f7   : > { %v2567_v32 = vpop.f32.mrf.mxu1 }
 0x1f8   : > { %v440_v33 = vmax.f32 %v433_v30, %v439_v31 }
 0x1f9   : > { %v436_v34 = vpop.f32.mrf.mxu1 }
 0x1fa   : > { %v441_v35 = vrot.slane %v440_v33, 2 }
 0x1fb   : > { %v2568_v36 = vpop.f32.mrf.mxu1 }
 0x1fc   : > { %v442_v37 = vmax.f32 %v440_v33, %v441_v35 }
 0x1fe   : > { %v443_v38 = vrot.slane %v442_v37, 1 }
 0x200   : > { %v444_v39 = vmax.f32 %v442_v37, %v443_v38 }
 0x202   : > { %v445_v40 = vsub.f32 %v433_v30, %v444_v39 }
 0x204   : > { %v446_v41 = vmul.f32 1.442695, %v445_v40 }
 0x206   : > { %2887 = vpow2.f32 %v446_v41 }
 0x213   : > { %v2888_v42 = vpop.eup %2887 }
 0x214   : > { %v448_v43 = vrot.slane %v2888_v42, 4 }
 0x216   : > { %v449_v44 = vadd.f32 %v2888_v42, %v448_v43 }
 0x218   : > { %v450_v45 = vrot.slane %v449_v44, 2 }
 0x21a   : > { %v451_v46 = vadd.f32 %v450_v45, %v449_v44 }
 0x21c   : > { %v452_v47 = vrot.slane %v451_v46, 1 }
 0x21e   : > { %v453_v48 = vadd.f32 %v452_v47, %v451_v46 }
 0x220   : > { %2889 = vrcp.f32 %v453_v48 }
 0x22d   : > { %v2890_v49 = vpop.eup %2889 }
 0x22e   : > { %v455_v50 = vmul.f32 %v2890_v49, %v2888_v42 }
 0x230   : > { %v498_v51 = vmul.f32 %v455_v50, %v433_v30  ;;  %v497_v52 = vpack.c.bf16 %v455_v50, %v455_v50 }
 0x232   : > { %v505_v54 = vsel %vm503_vm4, %v497_v52, 0 }
 0x233   : > { %2576 = vmatpush3.bf16.msra.mxu1 %v505_v54 }
 0x234   : > { %2587 = vmatprep.subr.bf16.mxu1 %v3076_v0 }
 0x236   : > { %2578 = vmatmul.mubr.msk.bf16.vlgmr.msra.gmra.mxu1 %vm499_vm5, %v496_v53 }
 0x237   : > { %2589 = vmatprep.mubr.msk.bf16.mxu1 %vm3077_vm0, %v3076_v0 }
 0x2f6   : > { %v541_v55 = vpop.f32.mrf.mxu1 }
 0x2f7   : > { %v542_v56 = vadd.f32 1e-06, %v541_v55 }
 0x2f8   : > { %v2579_v57 = vpop.f32.mrf.mxu1 }
 0x2f9   : > { %2891 = vrcp.f32 %v542_v56 }
 0x2fa   : > { %v544_v58 = vpop.f32.mrf.mxu1 }
 0x2fc   : > { %v2580_v59 = vpop.f32.mrf.mxu1 }
 0x306   : > { %v2892_v60 = vpop.eup %2891 }
 0x307   : > { %v3319_v61 = vmul.f32 %v2892_v60, %v498_v51 }
 0x309   : > { %v549_v62 = vpack.c.bf16 %v3319_v61, %v3319_v61 }
 0x30b   : > { %2584 = vmatmul.mubr.bf16.vlgmr.msra.gmra.mxu0 %v549_v62  ;;  %2588 = vmatpush3.bf16.xpose.msra.mxu1 %v549_v62  ;;  %v769_v23 = vsel %vm503_vm4, %v549_v62, 0 }
 0x30c   : > { %2599 = vmatprep.subr.bf16.mxu1 %v3076_v0  ;;  %2595 = vmatprep.mubr.msk.bf16.mxu0 %vm3077_vm0, %v3076_v0 }
 0x30d   : > { %2594 = vmatpush3.bf16.msra.mxu0 %v635_v63 }
 0x30e   : > { %2605 = vmatprep.subr.bf16.mxu0 %v3076_v0 }
 0x312   : > { %2590 = vmatmul.mubr.bf16.vlgmr.msra.gmra.mxu1 %v549_v62 }
 0x313   : > { %2600 = vmatpush3.bf16.msk.msra.mxu1 %vm3296_vm3, %v3300_v25  ;;  %2601 = vmatprep.mubr.msk.bf16.mxu1 %vm3077_vm0, %v3076_v0 }
 0x314   : > { %2611 = vmatprep.subr.bf16.mxu1 %v3076_v0 }
 0x3cb   : > { %v584_v4 = vpop.f32.mrf.mxu0 }
 0x3cc   : > { %v631_v19 = vmul.f32 %v584_v4, %v3283_v9 }
 0x3cd   : > { %v2585_v5 = vpop.f32.mrf.mxu0 }
 0x3cf   : > { %v587_v6 = vpop.f32.mrf.mxu0 }
 0x3d1   : > { %v2586_v7 = vpop.f32.mrf.mxu0 }
 0x3d2   : > { %v624_v8 = vpop.f32.mrf.mxu1 }
 0x3d3   : > { %v630_v11 = vpack.c.bf16 %v624_v8, %v624_v8 }
 0x3d4   : > { %v2591_v12 = vpop.f32.mrf.mxu1 }
 0x3d5   : > { %2596 = vmatmul.mubr.msk.bf16.vlgmr.msra.gmra.mxu0 %vm499_vm5, %v630_v11 }
 0x3d6   : > { %v627_v13 = vpop.f32.mrf.mxu1  ;;  %2607 = vmatprep.mubr.msk.bf16.mxu0 %vm3077_vm0, %v3076_v0 }
 0x3d8   : > { %v2592_v14 = vpop.f32.mrf.mxu1 }
 0x495   : > { %v671_v15 = vpop.f32.mrf.mxu0 }
 0x496   : > { %v672_v16 = vadd.f32 1e-06, %v671_v15 }
 0x497   : > { %v2597_v10 = vpop.f32.mrf.mxu0 }
 0x498   : > { %2893 = vrcp.f32 %v672_v16 }
 0x499   : > { %v674_v17 = vpop.f32.mrf.mxu0 }
 0x49b   : > { %v2598_v18 = vpop.f32.mrf.mxu0 }
 0x4a5   : > { %v2894_v20 = vpop.eup %2893 }
 0x4a6   : > { %v3339_v21 = vmul.f32 %v2894_v20, %v631_v19 }
 0x4a8   : > { %v679_v22 = vpack.c.bf16 %v3339_v21, %v3339_v21 }
 0x4aa   : > { %2602 = vmatmul.mubr.msk.bf16.vlgmr.msra.gmra.mxu1 %vm342_vm1, %v679_v22  ;;  %v681_v26 = vsel %vm342_vm1, %v679_v22, 0  ;;  %v899_v44 = vsel %vm503_vm4, %v679_v22, 0 }
 0x4ab   : > { %2612 = vmatpush3.bf16.msra.mxu1 %v769_v23  ;;  %2606 = vmatpush3.bf16.xpose.msra.mxu0 %v681_v26 }
 0x4ac   : > { %2617 = vmatprep.subr.bf16.mxu0 %v3076_v0  ;;  %2613 = vmatprep.mubr.msk.bf16.mxu1 %vm3077_vm0, %v3076_v0 }
 0x4ad   : > { %2623 = vmatprep.subr.bf16.mxu1 %v3076_v0 }
 0x4b2   : > { %2608 = vmatmul.mubr.msk.bf16.vlgmr.msra.gmra.mxu0 %vm342_vm1, %v679_v22 }
 0x4b3   : > { %2618 = vmatpush3.bf16.xpose.msk.msra.mxu0 %vm3296_vm3, %v3300_v25  ;;  %2619 = vmatprep.mubr.msk.bf16.mxu0 %vm3077_vm0, %v3076_v0 }
 0x4b4   : > { %2629 = vmatprep.subr.bf16.mxu0 %v3076_v0 }
 0x56a   : > { %v717_v9 = vpop.f32.mrf.mxu1 }
 0x56b   : > { %v764_v40 = vmul.f32 %v717_v9, %v3319_v61 }
 0x56c   : > { %v2603_v27 = vpop.f32.mrf.mxu1 }
 0x56e   : > { %v720_v28 = vpop.f32.mrf.mxu1 }
 0x570   : > { %v2604_v29 = vpop.f32.mrf.mxu1 }
 0x572   : > { %v757_v30 = vpop.f32.mrf.mxu0 }
 0x573   : > { %v763_v31 = vpack.c.bf16 %v757_v30, %v757_v30 }
 0x574   : > { %v2609_v32 = vpop.f32.mrf.mxu0 }
 0x575   : > { %2614 = vmatmul.mubr.msk.bf16.vlgmr.msra.gmra.mxu1 %vm499_vm5, %v763_v31 }
 0x576   : > { %v760_v33 = vpop.f32.mrf.mxu0  ;;  %2625 = vmatprep.mubr.msk.bf16.mxu1 %vm3077_vm0, %v3076_v0 }
 0x578   : > { %v2610_v34 = vpop.f32.mrf.mxu0 }
 0x635   : > { %v805_v35 = vpop.f32.mrf.mxu1 }
 0x636   : > { %v806_v36 = vadd.f32 1e-06, %v805_v35 }
 0x637   : > { %v2615_v37 = vpop.f32.mrf.mxu1 }
 0x638   : > { %2895 = vrcp.f32 %v806_v36 }
 0x639   : > { %v808_v38 = vpop.f32.mrf.mxu1 }
 0x63b   : > { %v2616_v39 = vpop.f32.mrf.mxu1 }
 0x645   : > { %v2896_v41 = vpop.eup %2895 }
 0x646   : > { %v3361_v42 = vmul.f32 %v2896_v41, %v764_v40 }
 0x648   : > { %v813_v43 = vpack.c.bf16 %v3361_v42, %v3361_v42 }
 0x64a   : > { %2620 = vmatmul.mubr.bf16.vlgmr.msra.gmra.mxu0 %v813_v43  ;;  %2624 = vmatpush3.bf16.xpose.msra.mxu1 %v813_v43  ;;  %v1033_v63 = vsel %vm503_vm4, %v813_v43, 0 }
 0x64b   : > { %2630 = vmatpush3.bf16.msra.mxu0 %v899_v44  ;;  %2635 = vmatprep.subr.bf16.mxu1 %v3076_v0 }
 0x64c   : > { %2631 = vmatprep.mubr.msk.bf16.mxu0 %vm3077_vm0, %v3076_v0  ;;  %2641 = vmatprep.subr.bf16.mxu0 %v3076_v0 }
 0x651   : > { %2626 = vmatmul.mubr.bf16.vlgmr.msra.gmra.mxu1 %v813_v43 }
 0x652   : > { %2636 = vmatpush3.bf16.msk.msra.mxu1 %vm3296_vm3, %v3300_v25  ;;  %2637 = vmatprep.mubr.msk.bf16.mxu1 %vm3077_vm0, %v3076_v0 }
 0x653   : > { %2647 = vmatprep.subr.bf16.mxu1 %v3076_v0 }
 0x70a   : > { %v848_v45 = vpop.f32.mrf.mxu0 }
 0x70b   : > { %v895_v59 = vmul.f32 %v848_v45, %v3339_v21 }
 0x70c   : > { %v2621_v46 = vpop.f32.mrf.mxu0 }
 0x70e   : > { %v851_v47 = vpop.f32.mrf.mxu0 }
 0x710   : > { %v2622_v48 = vpop.f32.mrf.mxu0 }
 0x711   : > { %v888_v49 = vpop.f32.mrf.mxu1 }
 0x712   : > { %v894_v50 = vpack.c.bf16 %v888_v49, %v888_v49 }
 0x713   : > { %v2627_v51 = vpop.f32.mrf.mxu1 }
 0x714   : > { %2632 = vmatmul.mubr.msk.bf16.vlgmr.msra.gmra.mxu0 %vm499_vm5, %v894_v50 }
 0x715   : > { %v891_v52 = vpop.f32.mrf.mxu1  ;;  %2643 = vmatprep.mubr.msk.bf16.mxu0 %vm3077_vm0, %v3076_v0 }
 0x717   : > { %v2628_v53 = vpop.f32.mrf.mxu1 }
 0x7d4   : > { %v935_v54 = vpop.f32.mrf.mxu0 }
 0x7d5   : > { %v936_v55 = vadd.f32 1e-06, %v935_v54 }
 0x7d6   : > { %v2633_v56 = vpop.f32.mrf.mxu0 }
 0x7d7   : > { %2897 = vrcp.f32 %v936_v55 }
 0x7d8   : > { %v938_v57 = vpop.f32.mrf.mxu0 }
 0x7da   : > { %v2634_v58 = vpop.f32.mrf.mxu0 }
 0x7e4   : > { %v2898_v60 = vpop.eup %2897 }
 0x7e5   : > { %v3380_v61 = vmul.f32 %v2898_v60, %v895_v59 }
 0x7e7   : > { %v943_v62 = vpack.c.bf16 %v3380_v61, %v3380_v61 }
 0x7e9   : > { %2638 = vmatmul.mubr.msk.bf16.vlgmr.msra.gmra.mxu1 %vm342_vm1, %v943_v62  ;;  %v945_v4 = vsel %vm342_vm1, %v943_v62, 0  ;;  %v1163_v26 = vsel %vm503_vm4, %v943_v62, 0 }
 0x7ea   : > { %2648 = vmatpush3.bf16.msra.mxu1 %v1033_v63  ;;  %2642 = vmatpush3.bf16.xpose.msra.mxu0 %v945_v4 }
 0x7eb   : > { %2653 = vmatprep.subr.bf16.mxu0 %v3076_v0  ;;  %2649 = vmatprep.mubr.msk.bf16.mxu1 %vm3077_vm0, %v3076_v0 }
 0x7ec   : > { %2659 = vmatprep.subr.bf16.mxu1 %v3076_v0 }
 0x7f1   : > { %2644 = vmatmul.mubr.msk.bf16.vlgmr.msra.gmra.mxu0 %vm342_vm1, %v943_v62 }
 0x7f2   : > { %2654 = vmatpush3.bf16.xpose.msk.msra.mxu0 %vm3296_vm3, %v3300_v25  ;;  %2655 = vmatprep.mubr.msk.bf16.mxu0 %vm3077_vm0, %v3076_v0 }
 0x7f3   : > { %2665 = vmatprep.subr.bf16.mxu0 %v3076_v0 }
 0x8a9   : > { %v981_v5 = vpop.f32.mrf.mxu1 }
 0x8aa   : > { %v1028_v20 = vmul.f32 %v981_v5, %v3361_v42 }
 0x8ab   : > { %v2639_v6 = vpop.f32.mrf.mxu1 }
 0x8ad   : > { %v984_v7 = vpop.f32.mrf.mxu1 }
 0x8af   : > { %v2640_v8 = vpop.f32.mrf.mxu1 }
 0x8b1   : > { %v1021_v11 = vpop.f32.mrf.mxu0 }
 0x8b2   : > { %v1027_v12 = vpack.c.bf16 %v1021_v11, %v1021_v11 }
 0x8b3   : > { %v2645_v13 = vpop.f32.mrf.mxu0 }
 0x8b4   : > { %2650 = vmatmul.mubr.msk.bf16.vlgmr.msra.gmra.mxu1 %vm499_vm5, %v1027_v12 }
 0x8b5   : > { %v1024_v14 = vpop.f32.mrf.mxu0  ;;  %2661 = vmatprep.mubr.msk.bf16.mxu1 %vm3077_vm0, %v3076_v0 }
 0x8b7   : > { %v2646_v15 = vpop.f32.mrf.mxu0 }
 0x974   : > { %v1069_v16 = vpop.f32.mrf.mxu1 }
 0x975   : > { %v1070_v10 = vadd.f32 1e-06, %v1069_v16 }
 0x976   : > { %v2651_v17 = vpop.f32.mrf.mxu1 }
 0x977   : > { %2899 = vrcp.f32 %v1070_v10 }
 0x978   : > { %v1072_v18 = vpop.f32.mrf.mxu1 }
 0x97a   : > { %v2652_v19 = vpop.f32.mrf.mxu1 }
 0x984   : > { %v2900_v21 = vpop.eup %2899 }
 0x985   : > { %v3402_v22 = vmul.f32 %v2900_v21, %v1028_v20 }
 0x987   : > { %v1077_v23 = vpack.c.bf16 %v3402_v22, %v3402_v22 }
 0x989   : > { %2656 = vmatmul.mubr.bf16.vlgmr.msra.gmra.mxu0 %v1077_v23  ;;  %2660 = vmatpush3.bf16.xpose.msra.mxu1 %v1077_v23  ;;  %v1297_v44 = vsel %vm503_vm4, %v1077_v23, 0 }
 0x98a   : > { %2666 = vmatpush3.bf16.msra.mxu0 %v1163_v26  ;;  %2671 = vmatprep.subr.bf16.mxu1 %v3076_v0 }
 0x98b   : > { %2667 = vmatprep.mubr.msk.bf16.mxu0 %vm3077_vm0, %v3076_v0  ;;  %2677 = vmatprep.subr.bf16.mxu0 %v3076_v0 }
 0x990   : > { %2662 = vmatmul.mubr.bf16.vlgmr.msra.gmra.mxu1 %v1077_v23 }
 0x991   : > { %2672 = vmatpush3.bf16.msk.msra.mxu1 %vm3296_vm3, %v3300_v25  ;;  %2673 = vmatprep.mubr.msk.bf16.mxu1 %vm3077_vm0, %v3076_v0 }
 0x992   : > { %2683 = vmatprep.subr.bf16.mxu1 %v3076_v0 }
 0xa49   : > { %v1112_v9 = vpop.f32.mrf.mxu0 }
 0xa4a   : > { %v1159_v40 = vmul.f32 %v1112_v9, %v3380_v61 }
 0xa4b   : > { %v2657_v27 = vpop.f32.mrf.mxu0 }
 0xa4d   : > { %v1115_v28 = vpop.f32.mrf.mxu0 }
 0xa4f   : > { %v2658_v29 = vpop.f32.mrf.mxu0 }
 0xa50   : > { %v1152_v30 = vpop.f32.mrf.mxu1 }
 0xa51   : > { %v1158_v31 = vpack.c.bf16 %v1152_v30, %v1152_v30 }
 0xa52   : > { %v2663_v32 = vpop.f32.mrf.mxu1 }
 0xa53   : > { %2668 = vmatmul.mubr.msk.bf16.vlgmr.msra.gmra.mxu0 %vm499_vm5, %v1158_v31 }
 0xa54   : > { %v1155_v33 = vpop.f32.mrf.mxu1  ;;  %2679 = vmatprep.mubr.msk.bf16.mxu0 %vm3077_vm0, %v3076_v0 }
 0xa56   : > { %v2664_v34 = vpop.f32.mrf.mxu1 }
 0xb13   : > { %v1199_v35 = vpop.f32.mrf.mxu0 }
 0xb14   : > { %v1200_v36 = vadd.f32 1e-06, %v1199_v35 }
 0xb15   : > { %v2669_v37 = vpop.f32.mrf.mxu0 }
 0xb16   : > { %2901 = vrcp.f32 %v1200_v36 }
 0xb17   : > { %v1202_v38 = vpop.f32.mrf.mxu0 }
 0xb19   : > { %v2670_v39 = vpop.f32.mrf.mxu0 }
 0xb23   : > { %v2902_v41 = vpop.eup %2901 }
 0xb24   : > { %v3421_v42 = vmul.f32 %v2902_v41, %v1159_v40 }
 0xb26   : > { %v1207_v43 = vpack.c.bf16 %v3421_v42, %v3421_v42 }
 0xb28   : > { %2674 = vmatmul.mubr.msk.bf16.vlgmr.msra.gmra.mxu1 %vm342_vm1, %v1207_v43  ;;  %v1209_v45 = vsel %vm342_vm1, %v1207_v43, 0  ;;  %v1427_v4 = vsel %vm503_vm4, %v1207_v43, 0 }
 0xb29   : > { %2684 = vmatpush3.bf16.msra.mxu1 %v1297_v44  ;;  %2678 = vmatpush3.bf16.xpose.msra.mxu0 %v1209_v45 }
 0xb2a   : > { %2689 = vmatprep.subr.bf16.mxu0 %v3076_v0  ;;  %2685 = vmatprep.mubr.msk.bf16.mxu1 %vm3077_vm0, %v3076_v0 }
 0xb2b   : > { %2695 = vmatprep.subr.bf16.mxu1 %v3076_v0 }
 0xb30   : > { %2680 = vmatmul.mubr.msk.bf16.vlgmr.msra.gmra.mxu0 %vm342_vm1, %v1207_v43 }
 0xb31   : > { %2690 = vmatpush3.bf16.xpose.msk.msra.mxu0 %vm3296_vm3, %v3300_v25  ;;  %2691 = vmatprep.mubr.msk.bf16.mxu0 %vm3077_vm0, %v3076_v0 }
 0xb32   : > { %2701 = vmatprep.subr.bf16.mxu0 %v3076_v0 }
 0xbe8   : > { %v1245_v46 = vpop.f32.mrf.mxu1 }
 0xbe9   : > { %v1292_v60 = vmul.f32 %v1245_v46, %v3402_v22 }
 0xbea   : > { %v2675_v47 = vpop.f32.mrf.mxu1 }
 0xbec   : > { %v1248_v48 = vpop.f32.mrf.mxu1 }
 0xbee   : > { %v2676_v49 = vpop.f32.mrf.mxu1 }
 0xbf0   : > { %v1285_v50 = vpop.f32.mrf.mxu0 }
 0xbf1   : > { %v1291_v51 = vpack.c.bf16 %v1285_v50, %v1285_v50 }
 0xbf2   : > { %v2681_v52 = vpop.f32.mrf.mxu0 }
 0xbf3   : > { %2686 = vmatmul.mubr.msk.bf16.vlgmr.msra.gmra.mxu1 %vm499_vm5, %v1291_v51 }
 0xbf4   : > { %v1288_v53 = vpop.f32.mrf.mxu0  ;;  %2697 = vmatprep.mubr.msk.bf16.mxu1 %vm3077_vm0, %v3076_v0 }
 0xbf6   : > { %v2682_v54 = vpop.f32.mrf.mxu0 }
 0xcb3   : > { %v1333_v55 = vpop.f32.mrf.mxu1 }
 0xcb4   : > { %v1334_v56 = vadd.f32 1e-06, %v1333_v55 }
 0xcb5   : > { %v2687_v57 = vpop.f32.mrf.mxu1 }
 0xcb6   : > { %2903 = vrcp.f32 %v1334_v56 }
 0xcb7   : > { %v1336_v58 = vpop.f32.mrf.mxu1 }
 0xcb9   : > { %v2688_v59 = vpop.f32.mrf.mxu1 }
 0xcc3   : > { %v2904_v61 = vpop.eup %2903 }
 0xcc4   : > { %v3443_v62 = vmul.f32 %v2904_v61, %v1292_v60 }
 0xcc6   : > { %v1341_v63 = vpack.c.bf16 %v3443_v62, %v3443_v62 }
 0xcc8   : > { %2692 = vmatmul.mubr.bf16.vlgmr.msra.gmra.mxu0 %v1341_v63  ;;  %2696 = vmatpush3.bf16.xpose.msra.mxu1 %v1341_v63  ;;  %v1561_v26 = vsel %vm503_vm4, %v1341_v63, 0 }
 0xcc9   : > { %2702 = vmatpush3.bf16.msra.mxu0 %v1427_v4  ;;  %2707 = vmatprep.subr.bf16.mxu1 %v3076_v0 }
 0xcca   : > { %2703 = vmatprep.mubr.msk.bf16.mxu0 %vm3077_vm0, %v3076_v0  ;;  %2713 = vmatprep.subr.bf16.mxu0 %v3076_v0 }
 0xccf   : > { %2698 = vmatmul.mubr.bf16.vlgmr.msra.gmra.mxu1 %v1341_v63 }
 0xcd0   : > { %2708 = vmatpush3.bf16.msk.msra.mxu1 %vm3296_vm3, %v3300_v25  ;;  %2709 = vmatprep.mubr.msk.bf16.mxu1 %vm3077_vm0, %v3076_v0 }
 0xcd1   : > { %2719 = vmatprep.subr.bf16.mxu1 %v3076_v0 }
 0xd88   : > { %v1376_v5 = vpop.f32.mrf.mxu0 }
 0xd89   : > { %v1423_v20 = vmul.f32 %v1376_v5, %v3421_v42 }
 0xd8a   : > { %v2693_v6 = vpop.f32.mrf.mxu0 }
 0xd8c   : > { %v1379_v7 = vpop.f32.mrf.mxu0 }
 0xd8e   : > { %v2694_v8 = vpop.f32.mrf.mxu0 }
 0xd8f   : > { %v1416_v11 = vpop.f32.mrf.mxu1 }
 0xd90   : > { %v1422_v12 = vpack.c.bf16 %v1416_v11, %v1416_v11 }
 0xd91   : > { %v2699_v13 = vpop.f32.mrf.mxu1 }
 0xd92   : > { %2704 = vmatmul.mubr.msk.bf16.vlgmr.msra.gmra.mxu0 %vm499_vm5, %v1422_v12 }
 0xd93   : > { %v1419_v14 = vpop.f32.mrf.mxu1  ;;  %2715 = vmatprep.mubr.msk.bf16.mxu0 %vm3077_vm0, %v3076_v0 }
 0xd95   : > { %v2700_v15 = vpop.f32.mrf.mxu1 }
 0xe52   : > { %v1463_v16 = vpop.f32.mrf.mxu0 }
 0xe53   : > { %v1464_v10 = vadd.f32 1e-06, %v1463_v16 }
 0xe54   : > { %v2705_v17 = vpop.f32.mrf.mxu0 }
 0xe55   : > { %2905 = vrcp.f32 %v1464_v10 }
 0xe56   : > { %v1466_v18 = vpop.f32.mrf.mxu0 }
 0xe58   : > { %v2706_v19 = vpop.f32.mrf.mxu0 }
 0xe62   : > { %v2906_v21 = vpop.eup %2905 }
 0xe63   : > { %v3462_v22 = vmul.f32 %v2906_v21, %v1423_v20 }
 0xe65   : > { %v1471_v23 = vpack.c.bf16 %v3462_v22, %v3462_v22 }
 0xe67   : > { %2710 = vmatmul.mubr.msk.bf16.vlgmr.msra.gmra.mxu1 %vm342_vm1, %v1471_v23  ;;  %v1473_v9 = vsel %vm342_vm1, %v1471_v23, 0  ;;  %v1691_v45 = vsel %vm503_vm4, %v1471_v23, 0 }
 0xe68   : > { %2720 = vmatpush3.bf16.msra.mxu1 %v1561_v26  ;;  %2714 = vmatpush3.bf16.xpose.msra.mxu0 %v1473_v9 }
 0xe69   : > { %2725 = vmatprep.subr.bf16.mxu0 %v3076_v0  ;;  %2721 = vmatprep.mubr.msk.bf16.mxu1 %vm3077_vm0, %v3076_v0 }
 0xe6a   : > { %2731 = vmatprep.subr.bf16.mxu1 %v3076_v0 }
 0xe6f   : > { %2716 = vmatmul.mubr.msk.bf16.vlgmr.msra.gmra.mxu0 %vm342_vm1, %v1471_v23 }
 0xe70   : > { %2726 = vmatpush3.bf16.xpose.msk.msra.mxu0 %vm3296_vm3, %v3300_v25  ;;  %2727 = vmatprep.mubr.msk.bf16.mxu0 %vm3077_vm0, %v3076_v0 }
 0xe71   : > { %2737 = vmatprep.subr.bf16.mxu0 %v3076_v0 }
 0xf27   : > { %v1509_v27 = vpop.f32.mrf.mxu1 }
 0xf28   : > { %v1556_v41 = vmul.f32 %v1509_v27, %v3443_v62 }
 0xf29   : > { %v2711_v28 = vpop.f32.mrf.mxu1 }
 0xf2b   : > { %v1512_v29 = vpop.f32.mrf.mxu1 }
 0xf2d   : > { %v2712_v30 = vpop.f32.mrf.mxu1 }
 0xf2f   : > { %v1549_v31 = vpop.f32.mrf.mxu0 }
 0xf30   : > { %v1555_v32 = vpack.c.bf16 %v1549_v31, %v1549_v31 }
 0xf31   : > { %v2717_v33 = vpop.f32.mrf.mxu0 }
 0xf32   : > { %2722 = vmatmul.mubr.msk.bf16.vlgmr.msra.gmra.mxu1 %vm499_vm5, %v1555_v32 }
 0xf33   : > { %v1552_v34 = vpop.f32.mrf.mxu0  ;;  %2733 = vmatprep.mubr.msk.bf16.mxu1 %vm3077_vm0, %v3076_v0 }
 0xf35   : > { %v2718_v35 = vpop.f32.mrf.mxu0 }
 0xff2   : > { %v1597_v36 = vpop.f32.mrf.mxu1 }
 0xff3   : > { %v1598_v37 = vadd.f32 1e-06, %v1597_v36 }
 0xff4   : > { %v2723_v38 = vpop.f32.mrf.mxu1 }
 0xff5   : > { %2907 = vrcp.f32 %v1598_v37 }
 0xff6   : > { %v1600_v39 = vpop.f32.mrf.mxu1 }
 0xff8   : > { %v2724_v40 = vpop.f32.mrf.mxu1 }
0x1002   : > { %v2908_v42 = vpop.eup %2907 }
0x1003   : > { %v3484_v43 = vmul.f32 %v2908_v42, %v1556_v41 }
0x1005   : > { %v1605_v44 = vpack.c.bf16 %v3484_v43, %v3484_v43 }
0x1007   : > { %2728 = vmatmul.mubr.bf16.vlgmr.msra.gmra.mxu0 %v1605_v44  ;;  %2732 = vmatpush3.bf16.xpose.msra.mxu1 %v1605_v44  ;;  %v1825_v4 = vsel %vm503_vm4, %v1605_v44, 0 }
0x1008   : > { %2738 = vmatpush3.bf16.msra.mxu0 %v1691_v45  ;;  %2743 = vmatprep.subr.bf16.mxu1 %v3076_v0 }
0x1009   : > { %2739 = vmatprep.mubr.msk.bf16.mxu0 %vm3077_vm0, %v3076_v0  ;;  %2749 = vmatprep.subr.bf16.mxu0 %v3076_v0 }
0x100e   : > { %2734 = vmatmul.mubr.bf16.vlgmr.msra.gmra.mxu1 %v1605_v44 }
0x100f   : > { %2744 = vmatpush3.bf16.msk.msra.mxu1 %vm3296_vm3, %v3300_v25  ;;  %2745 = vmatprep.mubr.msk.bf16.mxu1 %vm3077_vm0, %v3076_v0 }
0x1010   : > { %2755 = vmatprep.subr.bf16.mxu1 %v3076_v0 }
0x10c7   : > { %v1640_v46 = vpop.f32.mrf.mxu0 }
0x10c8   : > { %v1687_v60 = vmul.f32 %v1640_v46, %v3462_v22 }
0x10c9   : > { %v2729_v47 = vpop.f32.mrf.mxu0 }
0x10cb   : > { %v1643_v48 = vpop.f32.mrf.mxu0 }
0x10cd   : > { %v2730_v49 = vpop.f32.mrf.mxu0 }
0x10ce   : > { %v1680_v50 = vpop.f32.mrf.mxu1 }
0x10cf   : > { %v1686_v51 = vpack.c.bf16 %v1680_v50, %v1680_v50 }
0x10d0   : > { %v2735_v52 = vpop.f32.mrf.mxu1 }
0x10d1   : > { %2740 = vmatmul.mubr.msk.bf16.vlgmr.msra.gmra.mxu0 %vm499_vm5, %v1686_v51 }
0x10d2   : > { %v1683_v53 = vpop.f32.mrf.mxu1  ;;  %2751 = vmatprep.mubr.msk.bf16.mxu0 %vm3077_vm0, %v3076_v0 }
0x10d4   : > { %v2736_v54 = vpop.f32.mrf.mxu1 }
0x1191   : > { %v1727_v55 = vpop.f32.mrf.mxu0 }
0x1192   : > { %v1728_v56 = vadd.f32 1e-06, %v1727_v55 }
0x1193   : > { %v2741_v57 = vpop.f32.mrf.mxu0 }
0x1194   : > { %2909 = vrcp.f32 %v1728_v56 }
0x1195   : > { %v1730_v58 = vpop.f32.mrf.mxu0 }
0x1197   : > { %v2742_v59 = vpop.f32.mrf.mxu0 }
0x11a1   : > { %v2910_v61 = vpop.eup %2909 }
0x11a2   : > { %v3503_v62 = vmul.f32 %v2910_v61, %v1687_v60 }
0x11a4   : > { %v1735_v63 = vpack.c.bf16 %v3503_v62, %v3503_v62 }
0x11a6   : > { %2746 = vmatmul.mubr.msk.bf16.vlgmr.msra.gmra.mxu1 %vm342_vm1, %v1735_v63  ;;  %v1737_v5 = vsel %vm342_vm1, %v1735_v63, 0  ;;  %v1955_v9 = vsel %vm503_vm4, %v1735_v63, 0 }
0x11a7   : > { %2756 = vmatpush3.bf16.msra.mxu1 %v1825_v4  ;;  %2750 = vmatpush3.bf16.xpose.msra.mxu0 %v1737_v5 }
0x11a8   : > { %2761 = vmatprep.subr.bf16.mxu0 %v3076_v0  ;;  %2757 = vmatprep.mubr.msk.bf16.mxu1 %vm3077_vm0, %v3076_v0 }
0x11a9   : > { %2767 = vmatprep.subr.bf16.mxu1 %v3076_v0 }
0x11ae   : > { %2752 = vmatmul.mubr.msk.bf16.vlgmr.msra.gmra.mxu0 %vm342_vm1, %v1735_v63 }
0x11af   : > { %2762 = vmatpush3.bf16.xpose.msk.msra.mxu0 %vm3296_vm3, %v3300_v25  ;;  %2763 = vmatprep.mubr.msk.bf16.mxu0 %vm3077_vm0, %v3076_v0 }
0x11b0   : > { %2773 = vmatprep.subr.bf16.mxu0 %v3076_v0 }
0x1266   : > { %v1773_v6 = vpop.f32.mrf.mxu1 }
0x1267   : > { %v1820_v21 = vmul.f32 %v1773_v6, %v3484_v43 }
0x1268   : > { %v2747_v7 = vpop.f32.mrf.mxu1 }
0x126a   : > { %v1776_v8 = vpop.f32.mrf.mxu1 }
0x126c   : > { %v2748_v11 = vpop.f32.mrf.mxu1 }
0x126d   : > { %v2886_v11 = vld [vmem:[#allocation5] sm:$0xff]  }
0x126e   : > { %v1813_v12 = vpop.f32.mrf.mxu0 }
0x126f   : > { %v1819_v13 = vpack.c.bf16 %v1813_v12, %v1813_v12 }
0x1270   : > { %v2753_v14 = vpop.f32.mrf.mxu0 }
0x1271   : > { %2758 = vmatmul.mubr.msk.bf16.vlgmr.msra.gmra.mxu1 %vm499_vm5, %v1819_v13 }
0x1272   : > { %v1816_v15 = vpop.f32.mrf.mxu0  ;;  %2769 = vmatprep.mubr.msk.bf16.mxu1 %vm3077_vm0, %v3076_v0 }
0x1274   : > { %v2754_v16 = vpop.f32.mrf.mxu0 }
0x1331   : > { %v1861_v10 = vpop.f32.mrf.mxu1 }
0x1332   : > { %v1862_v17 = vadd.f32 1e-06, %v1861_v10  ;;  %v2206_v10 = vpop.permute.xlu0 %2205 }
0x1333   : > { %v2759_v18 = vpop.f32.mrf.mxu1 }
0x1334   : > { %2911 = vrcp.f32 %v1862_v17 }
0x1335   : > { %v1864_v19 = vpop.f32.mrf.mxu1 }
0x1337   : > { %v2760_v20 = vpop.f32.mrf.mxu1 }
0x1341   : > { %v2912_v22 = vpop.eup %2911 }
0x1342   : > { %v3525_v23 = vmul.f32 %v2912_v22, %v1820_v21 }
0x1344   : > { %v1869_v26 = vpack.c.bf16 %v3525_v23, %v3525_v23 }
0x1346   : > { %2764 = vmatmul.mubr.bf16.vlgmr.msra.gmra.mxu0 %v1869_v26  ;;  %2768 = vmatpush3.bf16.xpose.msra.mxu1 %v1869_v26  ;;  %v2089_v43 = vsel %vm503_vm4, %v1869_v26, 0 }
0x1347   : > { %2774 = vmatpush3.bf16.msra.mxu0 %v1955_v9  ;;  %2779 = vmatprep.subr.bf16.mxu1 %v3076_v0 }
0x1348   : > { %2775 = vmatprep.mubr.msk.bf16.mxu0 %vm3077_vm0, %v3076_v0  ;;  %2785 = vmatprep.subr.bf16.mxu0 %v3076_v0 }
0x134d   : > { %2770 = vmatmul.mubr.bf16.vlgmr.msra.gmra.mxu1 %v1869_v26 }
0x134e   : > { %2780 = vmatpush3.bf16.msk.msra.mxu1 %vm3296_vm3, %v3300_v25  ;;  %2781 = vmatprep.mubr.msk.bf16.mxu1 %vm3077_vm0, %v3076_v0 }
0x134f   : > { %2791 = vmatprep.subr.bf16.mxu1 %v3076_v0 }
0x1406   : > { %v1904_v27 = vpop.f32.mrf.mxu0 }
0x1407   : > { %v1951_v39 = vmul.f32 %v1904_v27, %v3503_v62 }
0x1408   : > { %v2765_v28 = vpop.f32.mrf.mxu0 }
0x140a   : > { %v1907_v29 = vpop.f32.mrf.mxu0 }
0x140c   : > { %v2766_v30 = vpop.f32.mrf.mxu0 }
0x140d   : > { %v1944_v31 = vpop.f32.mrf.mxu1 }
0x140e   : > { %v1950_v32 = vpack.c.bf16 %v1944_v31, %v1944_v31 }
0x140f   : > { %v2771_v33 = vpop.f32.mrf.mxu1 }
0x1410   : > { %2776 = vmatmul.mubr.msk.bf16.vlgmr.msra.gmra.mxu0 %vm499_vm5, %v1950_v32 }
0x1411   : > { %v1947_v34 = vpop.f32.mrf.mxu1  ;;  %2787 = vmatprep.mubr.msk.bf16.mxu0 %vm3077_vm0, %v3076_v0 }
0x1413   : > { %v2772_v24 = vpop.f32.mrf.mxu1 }
0x14d0   : > { %v1991_v25 = vpop.f32.mrf.mxu0 }
0x14d1   : > { %v1992_v35 = vadd.f32 1e-06, %v1991_v25 }
0x14d2   : > { %v2777_v36 = vpop.f32.mrf.mxu0 }
0x14d3   : > { %2913 = vrcp.f32 %v1992_v35 }
0x14d4   : > { %v1994_v37 = vpop.f32.mrf.mxu0 }
0x14d6   : > { %v2778_v38 = vpop.f32.mrf.mxu0 }
0x14e0   : > { %v2914_v40 = vpop.eup %2913 }
0x14e1   : > { %v1998_v41 = vmul.f32 %v2914_v40, %v1951_v39 }
0x14e3   : > { %v1999_v42 = vpack.c.bf16 %v1998_v41, %v1998_v41 }
0x14e5   : > { %2134 = vxpose.xlu1.c.b16.start.end [1/1] (short) (narrow) %v1999_v42, 16  ;;  %2782 = vmatmul.mubr.msk.bf16.vlgmr.msra.gmra.mxu1 %vm342_vm1, %v1999_v42  ;;  %v2001_v44 = vsel %vm342_vm1, %v1999_v42, 0 }
0x14e6   : > { %2792 = vmatpush3.bf16.msra.mxu1 %v2089_v43  ;;  %2786 = vmatpush3.bf16.xpose.msra.mxu0 %v2001_v44 }
0x14e7   : > { %2793 = vmatprep.mubr.msk.bf16.mxu1 %vm3077_vm0, %v3076_v0  ;;  %2797 = vmatprep.subr.bf16.mxu0 %v3076_v0 }
0x14e8   : > { %2803 = vmatprep.subr.bf16.mxu1 %v3076_v0 }
0x14e9   : > { %2884 = vset.pattern.permute.xlu1 %v3078_v1 }
0x14ed   : > { %2788 = vmatmul.mubr.msk.bf16.vlgmr.msra.gmra.mxu0 %vm342_vm1, %v1999_v42 }
0x14ee   : > { %2799 = vmatprep.mubr.msk.bf16.mxu0 %vm3077_vm0, %v3076_v0 }
0x1547   : > { %v2142_v63 = vpop.trf.xlu1 }
0x15a5   : > { %v2037_v45 = vpop.f32.mrf.mxu1 }
0x15a6   : > { %v2084_v58 = vmul.f32 %v2037_v45, %v3525_v23 }
0x15a7   : > { %v2783_v46 = vpop.f32.mrf.mxu1 }
0x15a9   : > { %v2040_v47 = vpop.f32.mrf.mxu1 }
0x15ab   : > { %v2784_v48 = vpop.f32.mrf.mxu1 }
0x15ad   : > { %v2077_v49 = vpop.f32.mrf.mxu0 }
0x15ae   : > { %v2083_v50 = vpack.c.bf16 %v2077_v49, %v2077_v49 }
0x15af   : > { %v2789_v51 = vpop.f32.mrf.mxu0 }
0x15b0   : > { %2794 = vmatmul.mubr.msk.bf16.vlgmr.msra.gmra.mxu1 %vm499_vm5, %v2083_v50 }
0x15b1   : > { %v2080_v52 = vpop.f32.mrf.mxu0  ;;  %2805 = vmatprep.mubr.msk.bf16.mxu1 %vm3077_vm0, %v3076_v0  ;;  %v323_v0 = vld [vmem:[%s3621_s4] sm:$0xff] }
0x15b2   : > { %2200 = vperm.xlu1 %2884, %v323_v0  }
0x15b3   : > { %v2790_v53 = vpop.f32.mrf.mxu0 }
0x162d   : > { %v2201_v12 = vpop.permute.xlu1 %2200 }
0x1670   : > { %v2125_v1 = vpop.f32.mrf.mxu1 }
0x1671   : > { %v2126_v54 = vadd.f32 1e-06, %v2125_v1 }
0x1672   : > { %v2795_v55 = vpop.f32.mrf.mxu1 }
0x1673   : > { %2915 = vrcp.f32 %v2126_v54 }
0x1674   : > { %v2128_v56 = vpop.f32.mrf.mxu1 }
0x1676   : > { %v2796_v57 = vpop.f32.mrf.mxu1 }
0x1680   : > { %v2916_v59 = vpop.eup %2915 }
0x1681   : > { %v2132_v60 = vmul.f32 %v2916_v59, %v2084_v58 }
0x1683   : > { %v2133_v61 = vpack.c.bf16 %v2132_v60, %v2132_v60 }
0x1685   : > { %v2154_v62 = vsel %vm503_vm4, %v2133_v61, 0 }
0x1686   : > { %2798 = vmatpush3.bf16.msra.mxu0 %v2154_v62 }
0x1689   : > { %2800 = vmatmul.mubr.msk.bf16.vlgmr.msra.gmra.mxu0 %vm499_vm5, %v2142_v63 }
0x1749   : > { %v2190_v4 = vpop.f32.mrf.mxu0 }
0x174b   : > { %v2801_v5 = vpop.f32.mrf.mxu0 }
0x174d   : > { %v2193_v6 = vpop.f32.mrf.mxu0 }
0x174e   : > { %v2197_v7 = vpack.c.bf16 %v2193_v6, %v2190_v4 }
0x174f   : > { %v2802_v8 = vpop.f32.mrf.mxu0 }
0x1750   : > { %2804 = vmatpush3.bf16.msra.mxu1 %v2197_v7 }
0x1753   : > { %2806 = vmatmul.mubr.msk.bf16.vlgmr.msra.gmra.mxu1 %vm342_vm1, %v2886_v11 }
0x1813   : > { %v2250_v13 = vpop.f32.mrf.mxu1 }
0x1814   : > { %v2251_v14 = vadd.f32 %v2250_v13, %v2201_v12 }
0x1815   : > { %v2807_v15 = vpop.f32.mrf.mxu1 }
0x1816   : > { %v2257_v16 = vadd.f32 %v2251_v14, %v3264_v2 }
0x1817   : > { %v2253_v17 = vpop.f32.mrf.mxu1 }
0x1818   : > { %v2254_v18 = vadd.f32 %v2253_v17, %v2206_v10  ;;  %v2259_v19 = vmax.f32 %v2257_v16, 0.0 }
0x1819   : > { %v2808_v20 = vpop.f32.mrf.mxu1 }
0x181a   : > { %v2258_v21 = vadd.f32 %v2254_v18, %v3266_v3  ;;  %2261 = vst [vmem:[%s308_s17] sm:$0xff] %v2259_v19 }
0x181c   : > { %v2260_v2 = vmax.f32 %v2258_v21, 0.0 }
0x181e   : > { %2262 = vst [vmem:[%s308_s17 + $0x8] sm:$0xff] %v2260_v2 }
0x181f   : > { %3010 = shalt.err (!%p3007_p10)
}
0x1820   : > { %s3011_s8 = scalar_lea.hbm %s3574_s9, 256  ;;  %s3015_s29 = scalar_lea.hbm %s3623_s6, 512 }
0x1821   : > { %p3012_p1 = scmp.ne.s32.totalorder %s3574_s9, %s3011_s8  ;;  %p3016_p6 = scmp.lt.s32.totalorder %s3574_s9, %s3623_s6 }
0x1822   : > { %p3017_p4 = scmp.lt.s32.totalorder %s3015_s29, %s3011_s8 }
0x1823   : > { %p3013_p0 = pnand %p3012_p1, %p3645_p11 }
0x1824   : > { %p3018_p8 = por %p3017_p4, %p3016_p6 }
0x1825   : > { %p3014_p2 = pneg %p3013_p0 }
0x1827   : > { %p3019_p3 = pnand %p3018_p8, %p3014_p2 }
0x1829   : > { %3022 = shalt.err (!%p3019_p3)
}
0x182a   : > { %s3080_s27 = smov 128   ;;  %s3081_s20 = smov 8  }
0x182b   : > { %2819 = dma.vmem_to_hbm [thread:$0]  (%p3645_p11), %s3569_s18, 256, %s3574_s9, %s2264_s11, %s3080_s27, %s3080_s27, %s3081_s20  }
0x182c PF: > { %s2292_s26 = sand.u32 1, %s3057_s21   ;;  %p3646_p12 = scmp.ne.s32.totalorder %s3630_s28, 0 }
0x182d   : > { %p3647_p7 = scmp.ge.s32.totalorder %s3069_s24, 2  ;;  %s2293_s12 = scalar_lea.sflag [#allocation4], %s2292_s26 }
0x182f   : > { %p2833_p9 = pnand %p3647_p7, %p3646_p12 }
0x1831   : > { %p2834_p13 = pneg %p2833_p9 }
0x1833   : > { %3052 = dma.done.wait (%p2834_p13), %s2293_s12, 256  }
0x1834   : > { %3054 = vsyncadd (%p2834_p13), %s2293_s12, 4294967040  ;;  %p18_p5 = scmp.ge.s32.totalorder %s3189_s19, 4   ;;  %s3648_s21 = smov %s3061_s22 }
0x1835   : > { %s3649_s22 = smov %s3065_s23  ;;  %s3650_s23 = smov %s3205_s7 }
0x1836   : > { %s3651_s24 = smov %s3189_s19  ;;  %20 = sbr.rel (!%p18_p5) target bundleno = 7 (0x7), region = 99 }
0x183b   :  { %2298 = vsyncpa [#allocation3], 1 }
0x183c   :  { %2300 = vsyncpa [#allocation3 + $0x1], 1 }
0x183d   :  { %2301 = vsyncpa [#allocation6], 1 }
0x183e   :  { %2302 = vsyncpa [#allocation4], 1 }
0x183f   :  { %2304 = vsyncpa [#allocation4 + $0x1], 1 }

</bundles_post_ra>
